<compile_context>
chip_gen: v7x
topology: tpu7x:2x2x1
jax: 0.10.0
libtpu: 0.0.40
codegen_flags: <defaults>
</compile_context>

<pallas_src>
import functools

import jax
import jax.numpy as jnp
from jax import lax
from jax.experimental import pallas as pl
from jax.experimental.pallas import tpu as pltpu

ITERS = 3  # default in clCELoss.__init__


def _round_up(x, m):
    return ((x + m - 1) // m) * m


# ---------------------------------------------------------------------------
# Pallas kernel: one group of K lane-packed samples per grid step
# ---------------------------------------------------------------------------
def _clce_kernel(rowm_ref, colm_ref, yp_ref, yt_ref, out_ref, *, iters):
    _, C, Hp, Wp = yp_ref.shape
    H2 = 2 * Hp

    logits = yp_ref[0].astype(jnp.float32)   # (C, Hp, Wp)
    target = yt_ref[0].astype(jnp.float32)   # (C, Hp, Wp) probability targets

    # ---- channel softmax + soft-target CE (reduction='none'); exp reused ---
    m = jnp.max(logits, axis=0, keepdims=True)
    z = logits - m                                   # (C, Hp, Wp)
    ez = jnp.exp(z)
    s = jnp.sum(ez, axis=0)                          # (Hp, Wp)
    log_s = jnp.log(s)
    # -sum_c t_c*(z_c - log s) == log(s)*sum_c t_c - sum_c t_c*z_c
    lp = log_s * jnp.sum(target, axis=0) - jnp.sum(target * z, axis=0)
    # TODO(synk): flip to approx=True on HW (routes the divide to the idle
    # EUP vrcp slot); kept exact here so the correctness check stays at 1e-4.
    p_fg = ez[1] * pl.reciprocal(s, approx=False)    # softmax(y_pred)[:, 1]
    t_fg = target[1]                                 # y_true[:, 1]
    # NOTE: foreground channel index 1 is part of the loss definition.

    # Stack both maps along sublanes -> one shared soft-skeleton pass.
    xs = jnp.concatenate([p_fg, t_fg], axis=0)       # (2*Hp, Wp)

    # ---- resident edge-validity masks (built once, in the wrapper) ---------
    r_up = rowm_ref[:, 0:1] > 0.5   # dest has a real in-image neighbour above
    r_dn = rowm_ref[:, 1:2] > 0.5   # ... below (same map)
    c_up = colm_ref[0:1, :] > 0.5   # ... left  (same sample strip)
    c_dn = colm_ref[1:2, :] > 0.5   # ... right (same sample strip)

    pinf = jnp.float32(jnp.inf)
    ninf = jnp.float32(-jnp.inf)

    # pltpu.roll == jnp.roll with non-negative shift:
    #   roll(x, 1)[i] = x[i-1],  roll(x, size-1)[i] = x[i+1]   (circular).
    def rolls_rows(a):
        return pltpu.roll(a, 1, axis=0), pltpu.roll(a, H2 - 1, axis=0)

    def rolls_cols(a):
        return pltpu.roll(a, 1, axis=1), pltpu.roll(a, Wp - 1, axis=1)

    def soft_erode(a, au, ad, al, ar):
        # min(3x1 min-pool, 1x3 min-pool); out-of-image neighbours = +inf
        pr = jnp.minimum(jnp.minimum(a, jnp.where(r_up, au, pinf)),
                         jnp.where(r_dn, ad, pinf))
        pc = jnp.minimum(jnp.minimum(a, jnp.where(c_up, al, pinf)),
                         jnp.where(c_dn, ar, pinf))
        return jnp.minimum(pr, pc)

    def soft_dilate(a, au, ad):
        # separable 3x3 max-pool; out-of-image neighbours = -inf
        t = jnp.maximum(jnp.maximum(a, jnp.where(r_up, au, ninf)),
                        jnp.where(r_dn, ad, ninf))
        tl, tr = rolls_cols(t)
        return jnp.maximum(jnp.maximum(t, jnp.where(c_up, tl, ninf)),
                           jnp.where(c_dn, tr, ninf))

    # ---- soft skeleton (unrolled); the row rolls of `er` are shared between
    #      soft_dilate(er) and the next iteration's soft_erode(er) -----------
    x = xs
    er = soft_erode(x, *rolls_rows(x), *rolls_cols(x))
    er_u, er_d = rolls_rows(er)
    skel = jax.nn.relu(x - soft_dilate(er, er_u, er_d))
    for _ in range(iters):
        x = er
        er = soft_erode(er, er_u, er_d, *rolls_cols(er))
        er_u, er_d = rolls_rows(er)
        delta = jax.nn.relu(x - soft_dilate(er, er_u, er_d))
        skel = skel + jax.nn.relu(delta - skel * delta)

    yp_sk = skel[:Hp, :]      # soft_skel(softmax(y_pred))[:, 1]  (lane-packed)
    yt_sk = skel[Hp:, :]      # soft_skel(y_true)[:, 1]           (lane-packed)

    # Pad/seam cells contribute 0 via lp == 0 there (wrapper zero-pads logits
    # and targets; skeleton values stay finite, never +/-inf).
    out_ref[0, 0] = jnp.sum(lp * yt_sk)   # tprec numerator (per group)
    out_ref[0, 1] = jnp.sum(lp * yp_sk)   # tsens numerator (per group)


@functools.partial(jax.jit, static_argnames=("iters",))
def clce_loss(y_pred, y_true, iters=ITERS):
    N, C, H, W = y_pred.shape
    assert y_true.shape == y_pred.shape

    # Lane packing: largest divisor K of N with K*W <= 128 samples per step.
    # (For large N this also keeps the parallel grid >= 2 steps for v7x's two
    # TensorCores; at tiny N max packing wins.)
    max_k = max(1, 128 // W)
    K = 1
    for k in range(min(N, max_k), 0, -1):
        if N % k == 0:
            K = k
            break
    G = N // K
    KW = K * W
    Hp = _round_up(H, 8)
    Wp = _round_up(KW, 128)

    def pack(a):  # (N, C, H, W) -> (G, C, Hp, Wp), samples side-by-side in W
        a = a.reshape(G, K, C, H, W)
        a = jnp.transpose(a, (0, 2, 3, 1, 4)).reshape(G, C, H, KW)
        return jnp.pad(a, ((0, 0), (0, 0), (0, Hp - H), (0, Wp - KW)))

    yp = pack(y_pred.astype(jnp.float32))
    yt = pack(y_true.astype(jnp.float32))

    # Analytic edge-validity masks (exact for any H, W; hoisted out of the
    # kernel and kept VMEM-resident via a constant index_map).
    i = jnp.arange(2 * Hp)
    r = i % Hp                                       # row index inside a map
    row_m = jnp.stack([(r >= 1) & (r < H),           # neighbour above exists
                       r <= (H - 2)],                # neighbour below exists
                      axis=1).astype(jnp.float32)    # (2*Hp, 2)
    c = jnp.arange(Wp)
    w_in = c % W                                     # column inside a strip
    valid_c = c < KW
    col_m = jnp.stack([(w_in >= 1) & valid_c,        # neighbour left exists
                       (w_in <= (W - 2)) & valid_c], # neighbour right exists
                      axis=0).astype(jnp.float32)    # (2, Wp)

    sums = pl.pallas_call(
        functools.partial(_clce_kernel, iters=iters),
        out_shape=jax.ShapeDtypeStruct((G, 2), jnp.float32),
        grid_spec=pltpu.PrefetchScalarGridSpec(
            num_scalar_prefetch=0,
            grid=(G,),
            in_specs=[
                pl.BlockSpec((2 * Hp, 2), lambda g: (0, 0)),   # resident masks
                pl.BlockSpec((2, Wp), lambda g: (0, 0)),       # resident masks
                pl.BlockSpec((1, C, Hp, Wp), lambda g: (g, 0, 0, 0)),
                pl.BlockSpec((1, C, Hp, Wp), lambda g: (g, 0, 0, 0)),
            ],
            out_specs=pl.BlockSpec((1, 2), lambda g: (g, 0),
                                   memory_space=pltpu.MemorySpace.SMEM),
        ),
        compiler_params=pltpu.CompilerParams(
            dimension_semantics=("parallel",)),
    )(row_m, col_m, yp, yt)

    denom = jnp.float32(N * H * W)
    tprec = jnp.sum(sums[:, 0]) / denom   # mean(l_unred * y_true_sk[:, 1])
    tsens = jnp.sum(sums[:, 1]) / denom   # mean(l_unred * y_pred_sk[:, 1])
    return tprec + tsens


# ---------------------------------------------------------------------------
# Pure-JAX reference (mirrors the PyTorch code) for correctness check
# ---------------------------------------------------------------------------
def _ref_soft_erode(x):
    neg = -x
    p1 = -lax.reduce_window(neg, -jnp.inf, lax.max, (1, 1, 3, 1), (1, 1, 1, 1),
                            [(0, 0), (0, 0), (1, 1), (0, 0)])
    p2 = -lax.reduce_window(neg, -jnp.inf, lax.max, (1, 1, 1, 3), (1, 1, 1, 1),
                            [(0, 0), (0, 0), (0, 0), (1, 1)])
    return jnp.minimum(p1, p2)


def _ref_soft_dilate(x):
    return lax.reduce_window(x, -jnp.inf, lax.max, (1, 1, 3, 3), (1, 1, 1, 1),
                             [(0, 0), (0, 0), (1, 1), (1, 1)])


def _ref_soft_skel(x, iters):
    x1 = _ref_soft_dilate(_ref_soft_erode(x))
    skel = jax.nn.relu(x - x1)
    for _ in range(iters):
        x = _ref_soft_erode(x)
        x1 = _ref_soft_dilate(_ref_soft_erode(x))
        delta = jax.nn.relu(x - x1)
        skel = skel + jax.nn.relu(delta - skel * delta)
    return skel


def ref_clce(y_pred, y_true, iters=ITERS):
    logp = jax.nn.log_softmax(y_pred, axis=1)
    l_unred = -jnp.sum(y_true * logp, axis=1)
    p = jax.nn.softmax(y_pred, axis=1)
    yp_sk = _ref_soft_skel(p, iters)
    yt_sk = _ref_soft_skel(y_true, iters)
    tprec = jnp.mean(l_unred * yt_sk[:, 1])
    tsens = jnp.mean(l_unred * yp_sk[:, 1])
    return tprec + tsens


if __name__ == "__main__":
    key = jax.random.PRNGKey(0)
    k1, k2 = jax.random.split(key)
    N, C, H, W = 2, 4, 16, 16

    y_pred = jax.random.normal(k1, (N, C, H, W), jnp.float32)           # logits
    # soft probability targets over the channel dim (valid for soft-target CE
    # and as input to soft_skel, matching the module's use of y_true)
    y_true = jax.nn.softmax(
        4.0 * jax.random.normal(k2, (N, C, H, W), jnp.float32), axis=1)

    out = clce_loss(y_pred, y_true)
    jax.block_until_ready(out)

    ref = ref_clce(y_pred, y_true)
    assert jnp.allclose(out, ref, rtol=1e-4, atol=1e-5), (out, ref)

    print("KERNEL_OK")
</pallas_src>

<mosaic_0001>
module attributes {stable_mosaic.version = 11 : i64} {
  func.func @_clce_kernel(%arg0: i32, %arg1: memref<32x2xf32, #tpu.memory_space<vmem>>, %arg2: memref<2x128xf32, #tpu.memory_space<vmem>>, %arg3: memref<1x4x16x128xf32, #tpu.memory_space<vmem>>, %arg4: memref<1x4x16x128xf32, #tpu.memory_space<vmem>>, %arg5: memref<1x2xf32, #tpu.memory_space<smem>>) attributes {dimension_semantics = [#tpu.dimension_semantics<parallel>], iteration_bounds = array<i64: 1>, scalar_prefetch = 0 : i64, scratch_operands = 0 : i64, tpu.core_type = #tpu.core_type<tc>, window_params = [{pipeline_mode = #tpu.pipeline_mode<synchronous>, transform_indices = @transform_0, window_bounds = array<i64: 32, 2>}, {pipeline_mode = #tpu.pipeline_mode<synchronous>, transform_indices = @transform_1, window_bounds = array<i64: 2, 128>}, {transform_indices = @transform_2, window_bounds = array<i64: 1, 4, 16, 128>}, {transform_indices = @transform_3, window_bounds = array<i64: 1, 4, 16, 128>}, {transform_indices = @transform_4, window_bounds = array<i64: 1, 2>}]} {
    %c0 = arith.constant 0 : index
    %c0_0 = arith.constant 0 : index
    %c0_1 = arith.constant 0 : index
    %c0_2 = arith.constant 0 : index
    %0 = vector.load %arg3[%c0, %c0_0, %c0_1, %c0_2] : memref<1x4x16x128xf32, #tpu.memory_space<vmem>>, vector<1x4x16x128xf32>
    %1 = vector.shape_cast %0 : vector<1x4x16x128xf32> to vector<4x16x128xf32>
    %c0_3 = arith.constant 0 : index
    %c0_4 = arith.constant 0 : index
    %c0_5 = arith.constant 0 : index
    %c0_6 = arith.constant 0 : index
    %2 = vector.load %arg4[%c0_3, %c0_4, %c0_5, %c0_6] : memref<1x4x16x128xf32, #tpu.memory_space<vmem>>, vector<1x4x16x128xf32>
    %3 = vector.shape_cast %2 : vector<1x4x16x128xf32> to vector<4x16x128xf32>
    %cst = arith.constant dense<0xFF800000> : vector<16x128xf32>
    %4 = vector.multi_reduction <maximumf>, %1, %cst [0] : vector<4x16x128xf32> to vector<16x128xf32>
    %5 = vector.shape_cast %4 : vector<16x128xf32> to vector<1x16x128xf32>
    %6 = vector.broadcast %5 : vector<1x16x128xf32> to vector<4x16x128xf32>
    %7 = arith.subf %1, %6 : vector<4x16x128xf32>
    %8 = math.exp %7 : vector<4x16x128xf32>
    %cst_7 = arith.constant dense<0.000000e+00> : vector<16x128xf32>
    %9 = vector.multi_reduction <add>, %8, %cst_7 [0] : vector<4x16x128xf32> to vector<16x128xf32>
    %10 = math.log %9 : vector<16x128xf32>
    %cst_8 = arith.constant dense<0.000000e+00> : vector<16x128xf32>
    %11 = vector.multi_reduction <add>, %3, %cst_8 [0] : vector<4x16x128xf32> to vector<16x128xf32>
    %12 = arith.mulf %10, %11 : vector<16x128xf32>
    %13 = arith.mulf %3, %7 : vector<4x16x128xf32>
    %cst_9 = arith.constant dense<0.000000e+00> : vector<16x128xf32>
    %14 = vector.multi_reduction <add>, %13, %cst_9 [0] : vector<4x16x128xf32> to vector<16x128xf32>
    %15 = arith.subf %12, %14 : vector<16x128xf32>
    %16 = vector.extract_strided_slice %8 {offsets = [1, 0, 0], sizes = [1, 16, 128], strides = [1, 1, 1]} : vector<4x16x128xf32> to vector<1x16x128xf32>
    %17 = vector.shape_cast %16 : vector<1x16x128xf32> to vector<16x128xf32>
    %18 = tpu.reciprocal %9 : vector<16x128xf32> -> vector<16x128xf32>
    %19 = arith.mulf %17, %18 : vector<16x128xf32>
    %20 = vector.extract_strided_slice %3 {offsets = [1, 0, 0], sizes = [1, 16, 128], strides = [1, 1, 1]} : vector<4x16x128xf32> to vector<1x16x128xf32>
    %21 = vector.shape_cast %20 : vector<1x16x128xf32> to vector<16x128xf32>
    %22 = tpu.concatenate %19, %21 in 0 : vector<16x128xf32>, vector<16x128xf32> -> vector<32x128xf32>
    %c0_10 = arith.constant 0 : index
    %c0_11 = arith.constant 0 : index
    %23 = vector.load %arg1[%c0_10, %c0_11] : memref<32x2xf32, #tpu.memory_space<vmem>>, vector<32x1xf32>
    %cst_12 = arith.constant 5.000000e-01 : f32
    %24 = vector.broadcast %cst_12 : f32 to vector<32x1xf32>
    %25 = arith.cmpf ogt, %23, %24 : vector<32x1xf32>
    %c0_13 = arith.constant 0 : index
    %c1 = arith.constant 1 : index
    %26 = vector.load %arg1[%c0_13, %c1] : memref<32x2xf32, #tpu.memory_space<vmem>>, vector<32x1xf32>
    %cst_14 = arith.constant 5.000000e-01 : f32
    %27 = vector.broadcast %cst_14 : f32 to vector<32x1xf32>
    %28 = arith.cmpf ogt, %26, %27 : vector<32x1xf32>
    %c0_15 = arith.constant 0 : index
    %c0_16 = arith.constant 0 : index
    %29 = vector.load %arg2[%c0_15, %c0_16] : memref<2x128xf32, #tpu.memory_space<vmem>>, vector<1x128xf32>
    %cst_17 = arith.constant 5.000000e-01 : f32
    %30 = vector.broadcast %cst_17 : f32 to vector<1x128xf32>
    %31 = arith.cmpf ogt, %29, %30 : vector<1x128xf32>
    %c1_18 = arith.constant 1 : index
    %c0_19 = arith.constant 0 : index
    %32 = vector.load %arg2[%c1_18, %c0_19] : memref<2x128xf32, #tpu.memory_space<vmem>>, vector<1x128xf32>
    %cst_20 = arith.constant 5.000000e-01 : f32
    %33 = vector.broadcast %cst_20 : f32 to vector<1x128xf32>
    %34 = arith.cmpf ogt, %32, %33 : vector<1x128xf32>
    %c1_i32 = arith.constant 1 : i32
    %35 = tpu.dynamic_rotate %22 by %c1_i32 dim 0 : vector<32x128xf32>, i32 -> vector<32x128xf32>
    %c31_i32 = arith.constant 31 : i32
    %36 = tpu.dynamic_rotate %22 by %c31_i32 dim 0 : vector<32x128xf32>, i32 -> vector<32x128xf32>
    %c1_i32_21 = arith.constant 1 : i32
    %37 = tpu.dynamic_rotate %22 by %c1_i32_21 dim 1 : vector<32x128xf32>, i32 -> vector<32x128xf32>
    %c127_i32 = arith.constant 127 : i32
    %38 = tpu.dynamic_rotate %22 by %c127_i32 dim 1 : vector<32x128xf32>, i32 -> vector<32x128xf32>
    %cst_22 = arith.constant 0x7F800000 : f32
    %39 = vector.shape_cast %25 : vector<32x1xi1> to vector<32x1xi1>
    %40 = vector.broadcast %39 : vector<32x1xi1> to vector<32x128xi1>
    %41 = vector.broadcast %cst_22 : f32 to vector<32x128xf32>
    %42 = arith.select %40, %35, %41 : vector<32x128xi1>, vector<32x128xf32>
    %43 = arith.minimumf %22, %42 : vector<32x128xf32>
    %cst_23 = arith.constant 0x7F800000 : f32
    %44 = vector.shape_cast %28 : vector<32x1xi1> to vector<32x1xi1>
    %45 = vector.broadcast %44 : vector<32x1xi1> to vector<32x128xi1>
    %46 = vector.broadcast %cst_23 : f32 to vector<32x128xf32>
    %47 = arith.select %45, %36, %46 : vector<32x128xi1>, vector<32x128xf32>
    %48 = arith.minimumf %43, %47 : vector<32x128xf32>
    %cst_24 = arith.constant 0x7F800000 : f32
    %49 = vector.shape_cast %31 : vector<1x128xi1> to vector<1x128xi1>
    %50 = vector.broadcast %49 : vector<1x128xi1> to vector<32x128xi1>
    %51 = vector.broadcast %cst_24 : f32 to vector<32x128xf32>
    %52 = arith.select %50, %37, %51 : vector<32x128xi1>, vector<32x128xf32>
    %53 = arith.minimumf %22, %52 : vector<32x128xf32>
    %cst_25 = arith.constant 0x7F800000 : f32
    %54 = vector.shape_cast %34 : vector<1x128xi1> to vector<1x128xi1>
    %55 = vector.broadcast %54 : vector<1x128xi1> to vector<32x128xi1>
    %56 = vector.broadcast %cst_25 : f32 to vector<32x128xf32>
    %57 = arith.select %55, %38, %56 : vector<32x128xi1>, vector<32x128xf32>
    %58 = arith.minimumf %53, %57 : vector<32x128xf32>
    %59 = arith.minimumf %48, %58 : vector<32x128xf32>
    %c1_i32_26 = arith.constant 1 : i32
    %60 = tpu.dynamic_rotate %59 by %c1_i32_26 dim 0 : vector<32x128xf32>, i32 -> vector<32x128xf32>
    %c31_i32_27 = arith.constant 31 : i32
    %61 = tpu.dynamic_rotate %59 by %c31_i32_27 dim 0 : vector<32x128xf32>, i32 -> vector<32x128xf32>
    %cst_28 = arith.constant 0xFF800000 : f32
    %62 = vector.shape_cast %25 : vector<32x1xi1> to vector<32x1xi1>
    %63 = vector.broadcast %62 : vector<32x1xi1> to vector<32x128xi1>
    %64 = vector.broadcast %cst_28 : f32 to vector<32x128xf32>
    %65 = arith.select %63, %60, %64 : vector<32x128xi1>, vector<32x128xf32>
    %66 = arith.maximumf %59, %65 : vector<32x128xf32>
    %cst_29 = arith.constant 0xFF800000 : f32
    %67 = vector.shape_cast %28 : vector<32x1xi1> to vector<32x1xi1>
    %68 = vector.broadcast %67 : vector<32x1xi1> to vector<32x128xi1>
    %69 = vector.broadcast %cst_29 : f32 to vector<32x128xf32>
    %70 = arith.select %68, %61, %69 : vector<32x128xi1>, vector<32x128xf32>
    %71 = arith.maximumf %66, %70 : vector<32x128xf32>
    %c1_i32_30 = arith.constant 1 : i32
    %72 = tpu.dynamic_rotate %71 by %c1_i32_30 dim 1 : vector<32x128xf32>, i32 -> vector<32x128xf32>
    %c127_i32_31 = arith.constant 127 : i32
    %73 = tpu.dynamic_rotate %71 by %c127_i32_31 dim 1 : vector<32x128xf32>, i32 -> vector<32x128xf32>
    %cst_32 = arith.constant 0xFF800000 : f32
    %74 = vector.shape_cast %31 : vector<1x128xi1> to vector<1x128xi1>
    %75 = vector.broadcast %74 : vector<1x128xi1> to vector<32x128xi1>
    %76 = vector.broadcast %cst_32 : f32 to vector<32x128xf32>
    %77 = arith.select %75, %72, %76 : vector<32x128xi1>, vector<32x128xf32>
    %78 = arith.maximumf %71, %77 : vector<32x128xf32>
    %cst_33 = arith.constant 0xFF800000 : f32
    %79 = vector.shape_cast %34 : vector<1x128xi1> to vector<1x128xi1>
    %80 = vector.broadcast %79 : vector<1x128xi1> to vector<32x128xi1>
    %81 = vector.broadcast %cst_33 : f32 to vector<32x128xf32>
    %82 = arith.select %80, %73, %81 : vector<32x128xi1>, vector<32x128xf32>
    %83 = arith.maximumf %78, %82 : vector<32x128xf32>
    %84 = arith.subf %22, %83 : vector<32x128xf32>
    %cst_34 = arith.constant 0.000000e+00 : f32
    %85 = vector.broadcast %cst_34 : f32 to vector<32x128xf32>
    %86 = arith.maximumf %84, %85 : vector<32x128xf32>
    %c1_i32_35 = arith.constant 1 : i32
    %87 = tpu.dynamic_rotate %59 by %c1_i32_35 dim 1 : vector<32x128xf32>, i32 -> vector<32x128xf32>
    %c127_i32_36 = arith.constant 127 : i32
    %88 = tpu.dynamic_rotate %59 by %c127_i32_36 dim 1 : vector<32x128xf32>, i32 -> vector<32x128xf32>
    %cst_37 = arith.constant 0x7F800000 : f32
    %89 = vector.shape_cast %25 : vector<32x1xi1> to vector<32x1xi1>
    %90 = vector.broadcast %89 : vector<32x1xi1> to vector<32x128xi1>
    %91 = vector.broadcast %cst_37 : f32 to vector<32x128xf32>
    %92 = arith.select %90, %60, %91 : vector<32x128xi1>, vector<32x128xf32>
    %93 = arith.minimumf %59, %92 : vector<32x128xf32>
    %cst_38 = arith.constant 0x7F800000 : f32
    %94 = vector.shape_cast %28 : vector<32x1xi1> to vector<32x1xi1>
    %95 = vector.broadcast %94 : vector<32x1xi1> to vector<32x128xi1>
    %96 = vector.broadcast %cst_38 : f32 to vector<32x128xf32>
    %97 = arith.select %95, %61, %96 : vector<32x128xi1>, vector<32x128xf32>
    %98 = arith.minimumf %93, %97 : vector<32x128xf32>
    %cst_39 = arith.constant 0x7F800000 : f32
    %99 = vector.shape_cast %31 : vector<1x128xi1> to vector<1x128xi1>
    %100 = vector.broadcast %99 : vector<1x128xi1> to vector<32x128xi1>
    %101 = vector.broadcast %cst_39 : f32 to vector<32x128xf32>
    %102 = arith.select %100, %87, %101 : vector<32x128xi1>, vector<32x128xf32>
    %103 = arith.minimumf %59, %102 : vector<32x128xf32>
    %cst_40 = arith.constant 0x7F800000 : f32
    %104 = vector.shape_cast %34 : vector<1x128xi1> to vector<1x128xi1>
    %105 = vector.broadcast %104 : vector<1x128xi1> to vector<32x128xi1>
    %106 = vector.broadcast %cst_40 : f32 to vector<32x128xf32>
    %107 = arith.select %105, %88, %106 : vector<32x128xi1>, vector<32x128xf32>
    %108 = arith.minimumf %103, %107 : vector<32x128xf32>
    %109 = arith.minimumf %98, %108 : vector<32x128xf32>
    %c1_i32_41 = arith.constant 1 : i32
    %110 = tpu.dynamic_rotate %109 by %c1_i32_41 dim 0 : vector<32x128xf32>, i32 -> vector<32x128xf32>
    %c31_i32_42 = arith.constant 31 : i32
    %111 = tpu.dynamic_rotate %109 by %c31_i32_42 dim 0 : vector<32x128xf32>, i32 -> vector<32x128xf32>
    %cst_43 = arith.constant 0xFF800000 : f32
    %112 = vector.shape_cast %25 : vector<32x1xi1> to vector<32x1xi1>
    %113 = vector.broadcast %112 : vector<32x1xi1> to vector<32x128xi1>
    %114 = vector.broadcast %cst_43 : f32 to vector<32x128xf32>
    %115 = arith.select %113, %110, %114 : vector<32x128xi1>, vector<32x128xf32>
    %116 = arith.maximumf %109, %115 : vector<32x128xf32>
    %cst_44 = arith.constant 0xFF800000 : f32
    %117 = vector.shape_cast %28 : vector<32x1xi1> to vector<32x1xi1>
    %118 = vector.broadcast %117 : vector<32x1xi1> to vector<32x128xi1>
    %119 = vector.broadcast %cst_44 : f32 to vector<32x128xf32>
    %120 = arith.select %118, %111, %119 : vector<32x128xi1>, vector<32x128xf32>
    %121 = arith.maximumf %116, %120 : vector<32x128xf32>
    %c1_i32_45 = arith.constant 1 : i32
    %122 = tpu.dynamic_rotate %121 by %c1_i32_45 dim 1 : vector<32x128xf32>, i32 -> vector<32x128xf32>
    %c127_i32_46 = arith.constant 127 : i32
    %123 = tpu.dynamic_rotate %121 by %c127_i32_46 dim 1 : vector<32x128xf32>, i32 -> vector<32x128xf32>
    %cst_47 = arith.constant 0xFF800000 : f32
    %124 = vector.shape_cast %31 : vector<1x128xi1> to vector<1x128xi1>
    %125 = vector.broadcast %124 : vector<1x128xi1> to vector<32x128xi1>
    %126 = vector.broadcast %cst_47 : f32 to vector<32x128xf32>
    %127 = arith.select %125, %122, %126 : vector<32x128xi1>, vector<32x128xf32>
    %128 = arith.maximumf %121, %127 : vector<32x128xf32>
    %cst_48 = arith.constant 0xFF800000 : f32
    %129 = vector.shape_cast %34 : vector<1x128xi1> to vector<1x128xi1>
    %130 = vector.broadcast %129 : vector<1x128xi1> to vector<32x128xi1>
    %131 = vector.broadcast %cst_48 : f32 to vector<32x128xf32>
    %132 = arith.select %130, %123, %131 : vector<32x128xi1>, vector<32x128xf32>
    %133 = arith.maximumf %128, %132 : vector<32x128xf32>
    %134 = arith.subf %59, %133 : vector<32x128xf32>
    %cst_49 = arith.constant 0.000000e+00 : f32
    %135 = vector.broadcast %cst_49 : f32 to vector<32x128xf32>
    %136 = arith.maximumf %134, %135 : vector<32x128xf32>
    %137 = arith.mulf %86, %136 : vector<32x128xf32>
    %138 = arith.subf %136, %137 : vector<32x128xf32>
    %cst_50 = arith.constant 0.000000e+00 : f32
    %139 = vector.broadcast %cst_50 : f32 to vector<32x128xf32>
    %140 = arith.maximumf %138, %139 : vector<32x128xf32>
    %141 = arith.addf %86, %140 : vector<32x128xf32>
    %c1_i32_51 = arith.constant 1 : i32
    %142 = tpu.dynamic_rotate %109 by %c1_i32_51 dim 1 : vector<32x128xf32>, i32 -> vector<32x128xf32>
    %c127_i32_52 = arith.constant 127 : i32
    %143 = tpu.dynamic_rotate %109 by %c127_i32_52 dim 1 : vector<32x128xf32>, i32 -> vector<32x128xf32>
    %cst_53 = arith.constant 0x7F800000 : f32
    %144 = vector.shape_cast %25 : vector<32x1xi1> to vector<32x1xi1>
    %145 = vector.broadcast %144 : vector<32x1xi1> to vector<32x128xi1>
    %146 = vector.broadcast %cst_53 : f32 to vector<32x128xf32>
    %147 = arith.select %145, %110, %146 : vector<32x128xi1>, vector<32x128xf32>
    %148 = arith.minimumf %109, %147 : vector<32x128xf32>
    %cst_54 = arith.constant 0x7F800000 : f32
    %149 = vector.shape_cast %28 : vector<32x1xi1> to vector<32x1xi1>
    %150 = vector.broadcast %149 : vector<32x1xi1> to vector<32x128xi1>
    %151 = vector.broadcast %cst_54 : f32 to vector<32x128xf32>
    %152 = arith.select %150, %111, %151 : vector<32x128xi1>, vector<32x128xf32>
    %153 = arith.minimumf %148, %152 : vector<32x128xf32>
    %cst_55 = arith.constant 0x7F800000 : f32
    %154 = vector.shape_cast %31 : vector<1x128xi1> to vector<1x128xi1>
    %155 = vector.broadcast %154 : vector<1x128xi1> to vector<32x128xi1>
    %156 = vector.broadcast %cst_55 : f32 to vector<32x128xf32>
    %157 = arith.select %155, %142, %156 : vector<32x128xi1>, vector<32x128xf32>
    %158 = arith.minimumf %109, %157 : vector<32x128xf32>
    %cst_56 = arith.constant 0x7F800000 : f32
    %159 = vector.shape_cast %34 : vector<1x128xi1> to vector<1x128xi1>
    %160 = vector.broadcast %159 : vector<1x128xi1> to vector<32x128xi1>
    %161 = vector.broadcast %cst_56 : f32 to vector<32x128xf32>
    %162 = arith.select %160, %143, %161 : vector<32x128xi1>, vector<32x128xf32>
    %163 = arith.minimumf %158, %162 : vector<32x128xf32>
    %164 = arith.minimumf %153, %163 : vector<32x128xf32>
    %c1_i32_57 = arith.constant 1 : i32
    %165 = tpu.dynamic_rotate %164 by %c1_i32_57 dim 0 : vector<32x128xf32>, i32 -> vector<32x128xf32>
    %c31_i32_58 = arith.constant 31 : i32
    %166 = tpu.dynamic_rotate %164 by %c31_i32_58 dim 0 : vector<32x128xf32>, i32 -> vector<32x128xf32>
    %cst_59 = arith.constant 0xFF800000 : f32
    %167 = vector.shape_cast %25 : vector<32x1xi1> to vector<32x1xi1>
    %168 = vector.broadcast %167 : vector<32x1xi1> to vector<32x128xi1>
    %169 = vector.broadcast %cst_59 : f32 to vector<32x128xf32>
    %170 = arith.select %168, %165, %169 : vector<32x128xi1>, vector<32x128xf32>
    %171 = arith.maximumf %164, %170 : vector<32x128xf32>
    %cst_60 = arith.constant 0xFF800000 : f32
    %172 = vector.shape_cast %28 : vector<32x1xi1> to vector<32x1xi1>
    %173 = vector.broadcast %172 : vector<32x1xi1> to vector<32x128xi1>
    %174 = vector.broadcast %cst_60 : f32 to vector<32x128xf32>
    %175 = arith.select %173, %166, %174 : vector<32x128xi1>, vector<32x128xf32>
    %176 = arith.maximumf %171, %175 : vector<32x128xf32>
    %c1_i32_61 = arith.constant 1 : i32
    %177 = tpu.dynamic_rotate %176 by %c1_i32_61 dim 1 : vector<32x128xf32>, i32 -> vector<32x128xf32>
    %c127_i32_62 = arith.constant 127 : i32
    %178 = tpu.dynamic_rotate %176 by %c127_i32_62 dim 1 : vector<32x128xf32>, i32 -> vector<32x128xf32>
    %cst_63 = arith.constant 0xFF800000 : f32
    %179 = vector.shape_cast %31 : vector<1x128xi1> to vector<1x128xi1>
    %180 = vector.broadcast %179 : vector<1x128xi1> to vector<32x128xi1>
    %181 = vector.broadcast %cst_63 : f32 to vector<32x128xf32>
    %182 = arith.select %180, %177, %181 : vector<32x128xi1>, vector<32x128xf32>
    %183 = arith.maximumf %176, %182 : vector<32x128xf32>
    %cst_64 = arith.constant 0xFF800000 : f32
    %184 = vector.shape_cast %34 : vector<1x128xi1> to vector<1x128xi1>
    %185 = vector.broadcast %184 : vector<1x128xi1> to vector<32x128xi1>
    %186 = vector.broadcast %cst_64 : f32 to vector<32x128xf32>
    %187 = arith.select %185, %178, %186 : vector<32x128xi1>, vector<32x128xf32>
    %188 = arith.maximumf %183, %187 : vector<32x128xf32>
    %189 = arith.subf %109, %188 : vector<32x128xf32>
    %cst_65 = arith.constant 0.000000e+00 : f32
    %190 = vector.broadcast %cst_65 : f32 to vector<32x128xf32>
    %191 = arith.maximumf %189, %190 : vector<32x128xf32>
    %192 = arith.mulf %141, %191 : vector<32x128xf32>
    %193 = arith.subf %191, %192 : vector<32x128xf32>
    %cst_66 = arith.constant 0.000000e+00 : f32
    %194 = vector.broadcast %cst_66 : f32 to vector<32x128xf32>
    %195 = arith.maximumf %193, %194 : vector<32x128xf32>
    %196 = arith.addf %141, %195 : vector<32x128xf32>
    %c1_i32_67 = arith.constant 1 : i32
    %197 = tpu.dynamic_rotate %164 by %c1_i32_67 dim 1 : vector<32x128xf32>, i32 -> vector<32x128xf32>
    %c127_i32_68 = arith.constant 127 : i32
    %198 = tpu.dynamic_rotate %164 by %c127_i32_68 dim 1 : vector<32x128xf32>, i32 -> vector<32x128xf32>
    %cst_69 = arith.constant 0x7F800000 : f32
    %199 = vector.shape_cast %25 : vector<32x1xi1> to vector<32x1xi1>
    %200 = vector.broadcast %199 : vector<32x1xi1> to vector<32x128xi1>
    %201 = vector.broadcast %cst_69 : f32 to vector<32x128xf32>
    %202 = arith.select %200, %165, %201 : vector<32x128xi1>, vector<32x128xf32>
    %203 = arith.minimumf %164, %202 : vector<32x128xf32>
    %cst_70 = arith.constant 0x7F800000 : f32
    %204 = vector.shape_cast %28 : vector<32x1xi1> to vector<32x1xi1>
    %205 = vector.broadcast %204 : vector<32x1xi1> to vector<32x128xi1>
    %206 = vector.broadcast %cst_70 : f32 to vector<32x128xf32>
    %207 = arith.select %205, %166, %206 : vector<32x128xi1>, vector<32x128xf32>
    %208 = arith.minimumf %203, %207 : vector<32x128xf32>
    %cst_71 = arith.constant 0x7F800000 : f32
    %209 = vector.shape_cast %31 : vector<1x128xi1> to vector<1x128xi1>
    %210 = vector.broadcast %209 : vector<1x128xi1> to vector<32x128xi1>
    %211 = vector.broadcast %cst_71 : f32 to vector<32x128xf32>
    %212 = arith.select %210, %197, %211 : vector<32x128xi1>, vector<32x128xf32>
    %213 = arith.minimumf %164, %212 : vector<32x128xf32>
    %cst_72 = arith.constant 0x7F800000 : f32
    %214 = vector.shape_cast %34 : vector<1x128xi1> to vector<1x128xi1>
    %215 = vector.broadcast %214 : vector<1x128xi1> to vector<32x128xi1>
    %216 = vector.broadcast %cst_72 : f32 to vector<32x128xf32>
    %217 = arith.select %215, %198, %216 : vector<32x128xi1>, vector<32x128xf32>
    %218 = arith.minimumf %213, %217 : vector<32x128xf32>
    %219 = arith.minimumf %208, %218 : vector<32x128xf32>
    %c1_i32_73 = arith.constant 1 : i32
    %220 = tpu.dynamic_rotate %219 by %c1_i32_73 dim 0 : vector<32x128xf32>, i32 -> vector<32x128xf32>
    %c31_i32_74 = arith.constant 31 : i32
    %221 = tpu.dynamic_rotate %219 by %c31_i32_74 dim 0 : vector<32x128xf32>, i32 -> vector<32x128xf32>
    %cst_75 = arith.constant 0xFF800000 : f32
    %222 = vector.shape_cast %25 : vector<32x1xi1> to vector<32x1xi1>
    %223 = vector.broadcast %222 : vector<32x1xi1> to vector<32x128xi1>
    %224 = vector.broadcast %cst_75 : f32 to vector<32x128xf32>
    %225 = arith.select %223, %220, %224 : vector<32x128xi1>, vector<32x128xf32>
    %226 = arith.maximumf %219, %225 : vector<32x128xf32>
    %cst_76 = arith.constant 0xFF800000 : f32
    %227 = vector.shape_cast %28 : vector<32x1xi1> to vector<32x1xi1>
    %228 = vector.broadcast %227 : vector<32x1xi1> to vector<32x128xi1>
    %229 = vector.broadcast %cst_76 : f32 to vector<32x128xf32>
    %230 = arith.select %228, %221, %229 : vector<32x128xi1>, vector<32x128xf32>
    %231 = arith.maximumf %226, %230 : vector<32x128xf32>
    %c1_i32_77 = arith.constant 1 : i32
    %232 = tpu.dynamic_rotate %231 by %c1_i32_77 dim 1 : vector<32x128xf32>, i32 -> vector<32x128xf32>
    %c127_i32_78 = arith.constant 127 : i32
    %233 = tpu.dynamic_rotate %231 by %c127_i32_78 dim 1 : vector<32x128xf32>, i32 -> vector<32x128xf32>
    %cst_79 = arith.constant 0xFF800000 : f32
    %234 = vector.shape_cast %31 : vector<1x128xi1> to vector<1x128xi1>
    %235 = vector.broadcast %234 : vector<1x128xi1> to vector<32x128xi1>
    %236 = vector.broadcast %cst_79 : f32 to vector<32x128xf32>
    %237 = arith.select %235, %232, %236 : vector<32x128xi1>, vector<32x128xf32>
    %238 = arith.maximumf %231, %237 : vector<32x128xf32>
    %cst_80 = arith.constant 0xFF800000 : f32
    %239 = vector.shape_cast %34 : vector<1x128xi1> to vector<1x128xi1>
    %240 = vector.broadcast %239 : vector<1x128xi1> to vector<32x128xi1>
    %241 = vector.broadcast %cst_80 : f32 to vector<32x128xf32>
    %242 = arith.select %240, %233, %241 : vector<32x128xi1>, vector<32x128xf32>
    %243 = arith.maximumf %238, %242 : vector<32x128xf32>
    %244 = arith.subf %164, %243 : vector<32x128xf32>
    %cst_81 = arith.constant 0.000000e+00 : f32
    %245 = vector.broadcast %cst_81 : f32 to vector<32x128xf32>
    %246 = arith.maximumf %244, %245 : vector<32x128xf32>
    %247 = arith.mulf %196, %246 : vector<32x128xf32>
    %248 = arith.subf %246, %247 : vector<32x128xf32>
    %cst_82 = arith.constant 0.000000e+00 : f32
    %249 = vector.broadcast %cst_82 : f32 to vector<32x128xf32>
    %250 = arith.maximumf %248, %249 : vector<32x128xf32>
    %251 = arith.addf %196, %250 : vector<32x128xf32>
    %252 = vector.extract_strided_slice %251 {offsets = [0, 0], sizes = [16, 128], strides = [1, 1]} : vector<32x128xf32> to vector<16x128xf32>
    %253 = vector.extract_strided_slice %251 {offsets = [16, 0], sizes = [16, 128], strides = [1, 1]} : vector<32x128xf32> to vector<16x128xf32>
    %254 = arith.mulf %15, %253 : vector<16x128xf32>
    %255 = vector.shape_cast %254 : vector<16x128xf32> to vector<1x16x128xf32>
    %cst_83 = arith.constant dense<0.000000e+00> : vector<1xf32>
    %256 = vector.multi_reduction <add>, %255, %cst_83 [1, 2] : vector<1x16x128xf32> to vector<1xf32>
    %257 = vector.shape_cast %256 : vector<1xf32> to vector<1x1x1xf32>
    %258 = vector.extract %257[0, 0, 0] : f32 from vector<1x1x1xf32>
    %c0_84 = arith.constant 0 : index
    %c0_85 = arith.constant 0 : index
    %259 = memref.load %arg5[%c0_84, %c0_85] : memref<1x2xf32, #tpu.memory_space<smem>>
    memref.store %258, %arg5[%c0_84, %c0_85] : memref<1x2xf32, #tpu.memory_space<smem>>
    %260 = arith.mulf %15, %252 : vector<16x128xf32>
    %261 = vector.shape_cast %260 : vector<16x128xf32> to vector<1x16x128xf32>
    %cst_86 = arith.constant dense<0.000000e+00> : vector<1xf32>
    %262 = vector.multi_reduction <add>, %261, %cst_86 [1, 2] : vector<1x16x128xf32> to vector<1xf32>
    %263 = vector.shape_cast %262 : vector<1xf32> to vector<1x1x1xf32>
    %264 = vector.extract %263[0, 0, 0] : f32 from vector<1x1x1xf32>
    %c0_87 = arith.constant 0 : index
    %c1_88 = arith.constant 1 : index
    %265 = memref.load %arg5[%c0_87, %c1_88] : memref<1x2xf32, #tpu.memory_space<smem>>
    memref.store %264, %arg5[%c0_87, %c1_88] : memref<1x2xf32, #tpu.memory_space<smem>>
    return
  }
  func.func @transform_0(%arg0: i32) -> (i32, i32) {
    %c0_i32 = arith.constant 0 : i32
    %c0_i32_0 = arith.constant 0 : i32
    %c0_i32_1 = arith.constant 0 : i32
    return %c0_i32, %c0_i32_0 : i32, i32
  }
  func.func @transform_1(%arg0: i32) -> (i32, i32) {
    %c0_i32 = arith.constant 0 : i32
    %c0_i32_0 = arith.constant 0 : i32
    %c0_i32_1 = arith.constant 0 : i32
    return %c0_i32, %c0_i32_0 : i32, i32
  }
  func.func @transform_2(%arg0: i32) -> (i32, i32, i32, i32) {
    %c0_i32 = arith.constant 0 : i32
    %c0_i32_0 = arith.constant 0 : i32
    %c0_i32_1 = arith.constant 0 : i32
    %c0_i32_2 = arith.constant 0 : i32
    return %arg0, %c0_i32, %c0_i32_0, %c0_i32_1 : i32, i32, i32, i32
  }
  func.func @transform_3(%arg0: i32) -> (i32, i32, i32, i32) {
    %c0_i32 = arith.constant 0 : i32
    %c0_i32_0 = arith.constant 0 : i32
    %c0_i32_1 = arith.constant 0 : i32
    %c0_i32_2 = arith.constant 0 : i32
    return %arg0, %c0_i32, %c0_i32_0, %c0_i32_1 : i32, i32, i32, i32
  }
  func.func @transform_4(%arg0: i32) -> (i32, i32) {
    %c0_i32 = arith.constant 0 : i32
    %c0_i32_0 = arith.constant 0 : i32
    return %arg0, %c0_i32 : i32, i32
  }
}

</mosaic_0001>

<bundles_post_ra>
// kernel: clce_loss.1
= control target key start
LH: loop header
LB: loop body
LE: loop exit
PB: predicated region body
PF: predicated region fallthrough
CT: control target
= control target key end

     0   :  { %v822_v1 = vmov 0   ;;  %s1732_s0 = inlined_call_operand.vmem [shape: f32[32,2], index: 0, kind: input, shape index: {}]   ;;  %s1733_s1 = inlined_call_operand.vmem [shape: f32[2,128], index: 1, kind: input, shape index: {}]   ;;  %s1734_s2 = inlined_call_operand.vmem [shape: f32[1,4,16,128], index: 2, kind: input, shape index: {}]   ;;  %s1735_s3 = inlined_call_operand.vmem [shape: f32[1,4,16,128], index: 3, kind: input, shape index: {}]   ;;  %s1736_s4 = inlined_call_operand.vmem [shape: f32[1,2], index: 4, kind: output, shape index: {}]  }
   0x1   :  { %v104_v0 = vld [vmem:[%s1732_s0 + $0x10] sm:$0xff]  ;;  %779 = vset.pattern.permute.xlu1 %v822_v1  ;;  %778 = vset.pattern.permute.xlu0 %v822_v1  ;;  %v102_v2 = vld [vmem:[%s1732_s0] sm:$0xff]  ;;  %v105_v3 = vld [vmem:[%s1732_s0 + $0x18] sm:$0xff] }
   0x2   :  { %vm108_vm0 = vcmp.gt.f32.partialorder %v104_v0, 0.5  ;;  %v103_v4 = vld [vmem:[%s1732_s0 + $0x8] sm:$0xff]  ;;  %vm106_vm1 = vcmp.gt.f32.partialorder %v102_v2, 0.5  ;;  %vm109_vm2 = vcmp.gt.f32.partialorder %v105_v3, 0.5  ;;  %v21_v8 = vld [vmem:[%s1734_s2 + $0x18] sm:$0xff]  ;;  %v18_v13 = vld [vmem:[%s1734_s2] sm:$0xff] }
   0x3   :  { %v152_v5 = vsel %vm108_vm0, 1, %v822_v1  ;;  %vm107_vm3 = vcmp.gt.f32.partialorder %v103_v4, 0.5  ;;  %v19_v6 = vld [vmem:[%s1734_s2 + $0x8] sm:$0xff]  ;;  %v150_v7 = vsel %vm106_vm1, 1, %v822_v1  ;;  %v153_v10 = vsel %vm109_vm2, 1, %v822_v1  ;;  %v25_v11 = vld [vmem:[%s1734_s2 + $0x38] sm:$0xff] }
   0x4   :  { %161 = vperm.xlu1 %779, %v152_v5   ;;  %v23_v9 = vld [vmem:[%s1734_s2 + $0x28] sm:$0xff]  ;;  %155 = vperm.xlu0 %778, %v150_v7   ;;  %v20_v14 = vld [vmem:[%s1734_s2 + $0x10] sm:$0xff]  ;;  %v151_v15 = vsel %vm107_vm3, 1, %v822_v1  ;;  %v38_v16 = vmax.f32 %v21_v8, %v25_v11  ;;  %v22_v17 = vld [vmem:[%s1734_s2 + $0x20] sm:$0xff] }
   0x5   :  { %v37_v12 = vmax.f32 %v19_v6, %v23_v9  ;;  %v24_v18 = vld [vmem:[%s1734_s2 + $0x30] sm:$0xff] }
   0x6   :  { %9 = vsyncpa [#allocation3], 0  ;;  %v34_v19 = vmax.f32 %v18_v13, %v22_v17  ;;  %v35_v20 = vmax.f32 %v20_v14, %v24_v18  ;;  %v823_v27 = vmov 1   ;;  %v920_v39 = vld [vmem:[%s1735_s3 + $0x10] sm:$0xff]  ;;  %v926_v41 = vld [vmem:[%s1735_s3 + $0x18] sm:$0xff]  ;;  %s824_s15 = smov 1   ;;  %v118_v2 = vlaneseq }
   0x7   :  { %v39_v21 = vmax.f32 %v37_v12, %v38_v16  ;;  %s825_s16 = smov 127   ;;  %v110_v3 = vld [vmem:[%s1733_s1] sm:$0x1]  ;;  %v127_v16 = vrot.slane %v920_v39, 1  ;;  %s760_s10 = sshll.u32 %s1736_s4, 4  ;;  %s761_s10 = int_to_ptr.vmem [resolvable:$true] %s760_s10 }
   0x8   :  { %164 = vperm.xlu1 %779, %v153_v10   ;;  %158 = vperm.xlu0 %778, %v151_v15   ;;  %v36_v22 = vmax.f32 %v34_v19, %v35_v20  ;;  %vm111_vm4 = vcmp.gt.f32.partialorder %v110_v3, 0.5  ;;  %s808_s12 = scalar_lea.vmem %s761_s10, 16  ;;  %p813_p1 = scmp.lt.s32.totalorder %s761_s10, %s761_s10 }
   0x9   :  { %v894_v23 = vsub.f32 %v19_v6, %v39_v21  ;;  %v896_v24 = vsub.f32 %v21_v8, %v39_v21  ;;  %v898_v25 = vsub.f32 %v23_v9, %v39_v21  ;;  %v900_v26 = vsub.f32 %v25_v11, %v39_v21  ;;  %p809_p0 = scmp.ne.s32.totalorder %s761_s10, %s808_s12  ;;  %p814_p2 = scmp.lt.s32.totalorder %s808_s12, %s808_s12 }
   0xa   :  { %v902_v28 = vsub.f32 %v18_v13, %v36_v22  ;;  %v904_v29 = vsub.f32 %v20_v14, %v36_v22  ;;  %v909_v33 = vsub.f32 %v22_v17, %v36_v22  ;;  %v912_v35 = vsub.f32 %v24_v18, %v36_v22 }
   0xb   :  { %1746 = vst [vmem:[#allocation5_spill] sm:$0xff] %v896_v24  ;;  %1747 = vst [vmem:[#allocation6_spill] sm:$0xff] %v898_v25  ;;  %v50_v30 = vmul.f32 1.442695, %v894_v23  ;;  %v54_v31 = vmul.f32 1.442695, %v896_v24  ;;  %p815_p3 = por %p814_p2, %p813_p1 }
   0xc   :  { %1748 = vst [vmem:[#allocation7_spill] sm:$0xff] %v900_v26  ;;  %781 = vset.pattern.permute.xlu1 %v823_v27  ;;  %1749 = vst [vmem:[#allocation8_spill] sm:$0xff] %v904_v29  ;;  %v58_v32 = vmul.f32 1.442695, %v898_v25  ;;  %780 = vset.pattern.permute.xlu0 %v823_v27  ;;  %v62_v34 = vmul.f32 1.442695, %v900_v26 }
   0xd   :  { %182 = vperm.xlu1 %781, %v151_v15   ;;  %1750 = vst [vmem:[#allocation9_spill] sm:$0xff] %v909_v33  ;;  %1751 = vst [vmem:[#allocation10_spill] sm:$0xff] %v912_v35  ;;  %179 = vperm.xlu0 %780, %v150_v7   ;;  %782 = vpow2.f32 %v50_v30  ;;  %v48_v36 = vmul.f32 1.442695, %v902_v28  ;;  %v52_v37 = vmul.f32 1.442695, %v904_v29  ;;  %p816_p4 = pnand %p815_p3, %p809_p0 }
   0xe   :  { %784 = vpow2.f32 %v54_v31  ;;  %v56_v38 = vmul.f32 1.442695, %v909_v33  ;;  %v60_v40 = vmul.f32 1.442695, %v912_v35  ;;  %v972_v6 = vshrl.u32 %v118_v2, 7 }
   0xf   :  { %786 = vpow2.f32 %v58_v32  ;;  %v202_v9 = vsel %vm111_vm4, 1, %v822_v1  ;;  %v117_v15 = vrot.slane %v926_v41, 7  ;;  %v128_v27 = vrot.slane %v926_v41, 1 }
  0x10   :  { %788 = vpow2.f32 %v62_v34  ;;  %v205_v8 = vsub.s32 0, %v972_v6  ;;  %vm120_vm6 = vcmp.lt.s32.totalorder %v972_v6, 1  ;;  %vm129_vm7 = vcmp.lt.s32.totalorder %v972_v6, 7 }
  0x11   :  { %185 = vperm.xlu1 %781, %v152_v5   ;;  %188 = vperm.xlu0 %780, %v153_v10   ;;  %790 = vpow2.f32 %v48_v36  ;;  %v112_v5 = vld [vmem:[%s1733_s1 + $0x1] sm:$0x1] }
  0x12   :  { %792 = vpow2.f32 %v52_v37  ;;  %vm113_vm5 = vcmp.gt.f32.partialorder %v112_v5, 0.5  ;;  %v980_v12 = vrot.slane %v202_v9, %v205_v8 }
  0x13   :  { %794 = vpow2.f32 %v56_v38  ;;  %v216_v13 = vsel %vm113_vm5, 1, %v822_v1  ;;  %v116_v1 = vrot.slane %v920_v39, 7 }
  0x14   :  { %796 = vpow2.f32 %v60_v40  ;;  %v990_v19 = vrot.slane %v216_v13, %v205_v8  ;;  %vm207_vm8 = vcmp.eq.s32.totalorder %v980_v12, 1 }
  0x15   :  { %138 = vrot.lane.b32.xlu1 %v920_v39, %s824_s15  ;;  %140 = vrot.lane.b32.xlu0 %v926_v41, %s824_s15  ;;  %v121_v32 = vsel %vm120_vm6, %v116_v1, %v117_v15 }
  0x16   :  { %vm221_vm13 = vcmp.eq.s32.totalorder %v990_v19, 1 }
  0x17   :  { %v783_v42 = vpop.eup %782 }
  0x18   :  { %v785_v43 = vpop.eup %784 }
  0x19   :  { %v787_v44 = vpop.eup %786  ;;  %v67_v45 = vadd.f32 %v785_v43, %v783_v42 }
  0x1a   :  { %v789_v46 = vpop.eup %788 }
  0x1b   :  { %v791_v47 = vpop.eup %790  ;;  %v68_v48 = vadd.f32 %v787_v44, %v67_v45 }
  0x1c   :  { %v793_v49 = vpop.eup %792 }
  0x1d   :  { %v795_v50 = vpop.eup %794  ;;  %v932_v51 = vadd.f32 %v789_v46, %v68_v48  ;;  %v64_v52 = vadd.f32 %v793_v49, %v791_v47 }
  0x1e   :  { %v797_v53 = vpop.eup %796 }
  0x1f   :  { %798 = vrcp.f32 %v932_v51  ;;  %v65_v54 = vadd.f32 %v795_v50, %v64_v52 }
  0x21   :  { %v935_v55 = vadd.f32 %v797_v53, %v65_v54 }
  0x23   :  { %800 = vrcp.f32 %v935_v55 }
  0x24   :  { %802 = vlog2.f32 %v935_v55 }
  0x25   :  { %804 = vlog2.f32 %v932_v51  ;;  %v30_v51 = vld [vmem:[%s1735_s3 + $0x20] sm:$0xff] }
  0x29   :  { %v799_v56 = vpop.eup %798 }
  0x2a   :  { %v938_v57 = vmul.f32 %v799_v56, %v785_v43  ;;  %v130_v56 = vsel %vm129_vm7, %v127_v16, %v128_v27 }
  0x2c   :  { %136 = vrot.lane.b32.xlu0 %v938_v57, %s824_s15  ;;  %v115_v17 = vrot.slane %v938_v57, 7  ;;  %v126_v18 = vrot.slane %v938_v57, 1 }
  0x2d   :  { %v801_v58 = vpop.eup %800 }
  0x2e   :  { %v942_v59 = vmul.f32 %v801_v58, %v793_v49  ;;  %v131_v36 = vsel %vm129_vm7, %v126_v18, %v127_v16  ;;  %v122_v40 = vsel %vm120_vm6, %v115_v17, %v116_v1 }
  0x30   :  { %134 = vrot.lane.b32.xlu1 %v942_v59, %s824_s15  ;;  %144 = vrot.lane.b32.xlu0 %v938_v57, %s825_s16  ;;  %v114_v14 = vrot.slane %v942_v59, 7  ;;  %v125_v21 = vrot.slane %v942_v59, 1 }
  0x32   :  { %v123_v22 = vsel %vm120_vm6, %v114_v14, %v115_v17  ;;  %v124_v31 = vsel %vm120_vm6, %v117_v15, %v114_v14  ;;  %v132_v38 = vsel %vm129_vm7, %v125_v21, %v126_v18  ;;  %v133_v44 = vsel %vm129_vm7, %v128_v27, %v125_v21 }
  0x34   :  { %142 = vrot.lane.b32.xlu1 %v942_v59, %s825_s16  ;;  %148 = vrot.lane.b32.xlu0 %v926_v41, %s825_s16 }
  0x38   :  { %146 = vrot.lane.b32.xlu1 %v920_v39, %s825_s16 }
  0x83   :  { %v954_v60 = vpop.permute.xlu0 %155  ;;  %v956_v61 = vpop.permute.xlu1 %161 }
  0x84   :  { %vm166_vm10 = vcmp.eq.s32.totalorder %v954_v60, 1  ;;  %vm168_vm14 = vcmp.eq.s32.totalorder %v956_v61, 1 }
  0x85   :  { %v170_v42 = vsel %vm166_vm10, %v124_v31, inf  ;;  %v172_v58 = vsel %vm168_vm14, %v122_v40, inf }
  0x86   :  { %v174_v3 = vmin.f32 %v942_v59, %v170_v42 }
  0x87   :  { %v958_v62 = vpop.permute.xlu0 %158  ;;  %v960_v63 = vpop.permute.xlu1 %164 }
  0x88   :  { %vm167_vm9 = vcmp.eq.s32.totalorder %v958_v62, 1  ;;  %vm169_vm11 = vcmp.eq.s32.totalorder %v960_v63, 1 }
  0x89   :  { %v171_v37 = vsel %vm167_vm9, %v123_v22, inf  ;;  %v173_v43 = vsel %vm169_vm11, %v121_v32, inf }
  0x8a   :  { %v175_v52 = vmin.f32 %v938_v57, %v171_v37  ;;  %v177_v14 = vmin.f32 %v926_v41, %v173_v43 }
  0x8c   :  { %v962_v0 = vpop.permute.xlu0 %179  ;;  %v967_v4 = vpop.permute.xlu1 %182 }
  0x8d   :  { %vm191_vm12 = vcmp.eq.s32.totalorder %v967_v4, 1  ;;  %vm190_vm15 = vcmp.eq.s32.totalorder %v962_v0, 1 }
  0x8e   :  { %v195_v48 = vsel %vm191_vm12, %v131_v36, inf  ;;  %v194_v5 = vsel %vm190_vm15, %v132_v38, inf  ;;  %v176_v36 = vmin.f32 %v920_v39, %v172_v58 }
  0x8f   :  { %v199_v2 = vmin.f32 %v175_v52, %v195_v48  ;;  %v198_v1 = vmin.f32 %v174_v3, %v194_v5 }
  0x90   :  { %v974_v7 = vpop.permute.xlu0 %188  ;;  %v978_v10 = vpop.permute.xlu1 %185 }
  0x91   :  { %vm193_vm0 = vcmp.eq.s32.totalorder %v974_v7, 1  ;;  %vm192_vm1 = vcmp.eq.s32.totalorder %v978_v10, 1 }
  0x92   :  { %v197_v8 = vsel %vm193_vm0, %v133_v44, inf  ;;  %v196_v31 = vsel %vm192_vm1, %v130_v56, inf }
  0x93   :  { %v201_v27 = vmin.f32 %v177_v14, %v197_v8  ;;  %v200_v42 = vmin.f32 %v176_v36, %v196_v31 }
  0x94   :  { %v141_v11 = vpop.permute.xlu0 %140  ;;  %v139_v20 = vpop.permute.xlu1 %138 }
  0x95   :  { %v211_v49 = vsel %vm207_vm8, %v141_v11, inf  ;;  %v210_v16 = vsel %vm207_vm8, %v139_v20, inf }
  0x96   :  { %v215_v9 = vmin.f32 %v926_v41, %v211_v49  ;;  %v214_v32 = vmin.f32 %v920_v39, %v210_v16 }
  0x9e   :  { %v137_v30 = vpop.permute.xlu0 %136 }
  0x9f   :  { %v209_v34 = vsel %vm207_vm8, %v137_v30, inf }
  0xa0   :  { %v213_v45 = vmin.f32 %v938_v57, %v209_v34 }
  0xa2   :  { %v135_v46 = vpop.permute.xlu1 %134  ;;  %v145_v47 = vpop.permute.xlu0 %144 }
  0xa3   :  { %v208_v50 = vsel %vm207_vm8, %v135_v46, inf  ;;  %v223_v53 = vsel %vm221_vm13, %v145_v47, inf }
  0xa4   :  { %v227_v54 = vmin.f32 %v213_v45, %v223_v53  ;;  %v212_v11 = vmin.f32 %v942_v59, %v208_v50 }
  0xa6   :  { %v143_v13 = vpop.permute.xlu1 %142  ;;  %v149_v15 = vpop.permute.xlu0 %148  ;;  %v1051_v17 = vmin.f32 %v199_v2, %v227_v54 }
  0xa7   :  { %v222_v18 = vsel %vm221_vm13, %v143_v13, inf  ;;  %v225_v21 = vsel %vm221_vm13, %v149_v15, inf }
  0xa8   :  { %v226_v22 = vmin.f32 %v212_v11, %v222_v18  ;;  %v229_v30 = vmin.f32 %v215_v9, %v225_v21  ;;  %v235_v40 = vrot.slane %v1051_v17, 7  ;;  %v243_v49 = vrot.slane %v1051_v17, 1 }
  0xaa   :  { %v1060_v34 = vmin.f32 %v198_v1, %v226_v22  ;;  %v1062_v20 = vmin.f32 %v201_v27, %v229_v30  ;;  %v147_v37 = vpop.permute.xlu1 %146 }
  0xab   :  { %v224_v38 = vsel %vm221_vm13, %v147_v37, inf }
  0xac   :  { %v228_v43 = vmin.f32 %v214_v32, %v224_v38  ;;  %312 = vrot.lane.b32.xlu0 %v1062_v20, %s824_s15  ;;  %v237_v44 = vrot.slane %v1062_v20, 7  ;;  %v234_v45 = vrot.slane %v1060_v34, 7  ;;  %v242_v48 = vrot.slane %v1060_v34, 1 }
  0xad   :  { %v245_v54 = vrot.slane %v1062_v20, 1 }
  0xae   :  { %v1072_v46 = vmin.f32 %v200_v42, %v228_v43  ;;  %v241_v47 = vsel %vm120_vm6, %v237_v44, %v234_v45  ;;  %v240_v50 = vsel %vm120_vm6, %v234_v45, %v235_v40  ;;  %v1091_v58 = vsel %vm129_vm7, %v242_v48, %v243_v49 }
  0xaf   :  { %v250_v56 = vsel %vm166_vm10, %v241_v47, -inf  ;;  %v251_v3 = vsel %vm167_vm9, %v240_v50, -inf  ;;  %v249_v9 = vsel %vm129_vm7, %v245_v54, %v242_v48  ;;  %v258_v13 = vsel %vm190_vm15, %v1091_v58, -inf }
  0xb0   :  { %310 = vrot.lane.b32.xlu1 %v1072_v46, %s824_s15  ;;  %308 = vrot.lane.b32.xlu0 %v1051_v17, %s824_s15  ;;  %v244_v52 = vrot.slane %v1072_v46, 1  ;;  %v236_v53 = vrot.slane %v1072_v46, 7  ;;  %v254_v11 = vmax.f32 %v1060_v34, %v250_v56  ;;  %v255_v14 = vmax.f32 %v1051_v17, %v251_v3 }
  0xb1   :  { %v261_v27 = vsel %vm193_vm0, %v249_v9, -inf  ;;  %v322_v3 = vsel %vm166_vm10, %v241_v47, inf }
  0xb2   :  { %v247_v2 = vsel %vm129_vm7, %v243_v49, %v244_v52  ;;  %v238_v5 = vsel %vm120_vm6, %v236_v53, %v237_v44  ;;  %v239_v8 = vsel %vm120_vm6, %v235_v40, %v236_v53  ;;  %v246_v18 = vsel %vm129_vm7, %v244_v52, %v245_v54 }
  0xb3   :  { %v259_v15 = vsel %vm191_vm12, %v247_v2, -inf  ;;  %v253_v16 = vsel %vm169_vm11, %v238_v5, -inf  ;;  %v1118_v21 = vmax.f32 %v254_v11, %v258_v13  ;;  %v252_v30 = vsel %vm168_vm14, %v239_v8, -inf }
  0xb4   :  { %306 = vrot.lane.b32.xlu1 %v1060_v34, %s824_s15  ;;  %316 = vrot.lane.b32.xlu0 %v1051_v17, %s825_s16  ;;  %v257_v1 = vmax.f32 %v1062_v20, %v253_v16  ;;  %v1121_v22 = vmax.f32 %v255_v14, %v259_v15  ;;  %v256_v32 = vmax.f32 %v1072_v46, %v252_v30  ;;  %v260_v36 = vsel %vm192_vm1, %v246_v18, -inf }
  0xb5   :  { %v325_v43 = vsel %vm169_vm11, %v238_v5, inf  ;;  %v324_v53 = vsel %vm168_vm14, %v239_v8, inf  ;;  %v323_v5 = vsel %vm167_vm9, %v240_v50, inf  ;;  %v333_v15 = vsel %vm193_vm0, %v249_v9, inf }
  0xb6   :  { %v1131_v31 = vmax.f32 %v257_v1, %v261_v27  ;;  %v1136_v37 = vmax.f32 %v256_v32, %v260_v36  ;;  %v329_v49 = vmin.f32 %v1062_v20, %v325_v43  ;;  %v328_v47 = vmin.f32 %v1072_v46, %v324_v53 }
  0xb7   :  { %v331_v30 = vsel %vm191_vm12, %v247_v2, inf  ;;  %v327_v36 = vmin.f32 %v1051_v17, %v323_v5 }
  0xb8   :  { %314 = vrot.lane.b32.xlu1 %v1060_v34, %s825_s16  ;;  %320 = vrot.lane.b32.xlu0 %v1062_v20, %s825_s16  ;;  %v337_v1 = vmin.f32 %v329_v49, %v333_v15 }
  0xbc   :  { %318 = vrot.lane.b32.xlu1 %v1072_v46, %s825_s16 }
 0x11e   :  { %v313_v38 = vpop.permute.xlu0 %312 }
 0x11f   :  { %v341_v48 = vsel %vm207_vm8, %v313_v38, inf }
 0x120   :  { %v345_v54 = vmin.f32 %v1062_v20, %v341_v48  ;;  %v335_v48 = vmin.f32 %v327_v36, %v331_v30 }
 0x122   :  { %v311_v40 = vpop.permute.xlu1 %310  ;;  %v309_v42 = vpop.permute.xlu0 %308 }
 0x123   :  { %v339_v52 = vsel %vm207_vm8, %v309_v42, inf  ;;  %v340_v13 = vsel %vm207_vm8, %v311_v40, inf  ;;  %v326_v42 = vmin.f32 %v1060_v34, %v322_v3 }
 0x124   :  { %v343_v16 = vmin.f32 %v1051_v17, %v339_v52  ;;  %v344_v32 = vmin.f32 %v1072_v46, %v340_v13 }
 0x126   :  { %v307_v44 = vpop.permute.xlu1 %306  ;;  %v317_v45 = vpop.permute.xlu0 %316 }
 0x127   :  { %v347_v14 = vsel %vm221_vm13, %v317_v45, inf  ;;  %v338_v50 = vsel %vm207_vm8, %v307_v44, inf  ;;  %v332_v45 = vsel %vm192_vm1, %v246_v18, inf  ;;  %v330_v18 = vsel %vm190_vm15, %v1091_v58, inf }
 0x128   :  { %v351_v9 = vmin.f32 %v343_v16, %v347_v14  ;;  %v342_v2 = vmin.f32 %v1060_v34, %v338_v50  ;;  %v336_v49 = vmin.f32 %v328_v47, %v332_v45 }
 0x12a   :  { %v315_v56 = vpop.permute.xlu1 %314  ;;  %v321_v11 = vpop.permute.xlu0 %320 }
 0x12b   :  { %v349_v8 = vsel %vm221_vm13, %v321_v11, inf  ;;  %v346_v43 = vsel %vm221_vm13, %v315_v56, inf  ;;  %v334_v56 = vmin.f32 %v326_v42, %v330_v18 }
 0x12c   :  { %v353_v27 = vmin.f32 %v345_v54, %v349_v8  ;;  %v350_v53 = vmin.f32 %v342_v2, %v346_v43  ;;  %v1182_v54 = vmin.f32 %v335_v48, %v351_v9 }
 0x12e   :  { %v319_v38 = vpop.permute.xlu1 %318  ;;  %v1170_v40 = vmin.f32 %v337_v1, %v353_v27  ;;  %v1193_v5 = vmin.f32 %v334_v56, %v350_v53  ;;  %v359_v15 = vrot.slane %v1182_v54, 7  ;;  %v367_v16 = vrot.slane %v1182_v54, 1 }
 0x12f   :  { %v348_v44 = vsel %vm221_vm13, %v319_v38, inf }
 0x130   :  { %v352_v52 = vmin.f32 %v344_v32, %v348_v44  ;;  %452 = vrot.lane.b32.xlu0 %v1170_v40, %s824_s15  ;;  %v361_v58 = vrot.slane %v1170_v40, 7  ;;  %v358_v13 = vrot.slane %v1193_v5, 7  ;;  %v366_v1 = vrot.slane %v1193_v5, 1 }
 0x131   :  { %v369_v30 = vrot.slane %v1170_v40, 1 }
 0x132   :  { %v1184_v3 = vmin.f32 %v336_v49, %v352_v52  ;;  %v1211_v8 = vsel %vm120_vm6, %v361_v58, %v358_v13  ;;  %v1223_v36 = vsel %vm120_vm6, %v358_v13, %v359_v15  ;;  %v1236_v43 = vsel %vm129_vm7, %v366_v1, %v367_v16 }
 0x133   :  { %v462_v9 = vsel %vm166_vm10, %v1211_v8, inf  ;;  %v463_v48 = vsel %vm167_vm9, %v1223_v36, inf  ;;  %v1247_v52 = vsel %vm129_vm7, %v369_v30, %v366_v1 }
 0x134   :  { %450 = vrot.lane.b32.xlu1 %v1184_v3, %s824_s15  ;;  %448 = vrot.lane.b32.xlu0 %v1182_v54, %s824_s15  ;;  %v360_v14 = vrot.slane %v1184_v3, 7  ;;  %v368_v47 = vrot.slane %v1184_v3, 1  ;;  %v466_v49 = vmin.f32 %v1193_v5, %v462_v9 }
 0x136   :  { %v1219_v32 = vsel %vm120_vm6, %v360_v14, %v361_v58  ;;  %v1232_v42 = vsel %vm129_vm7, %v367_v16, %v368_v47  ;;  %v1251_v53 = vsel %vm120_vm6, %v359_v15, %v360_v14  ;;  %v470_v14 = vsel %vm190_vm15, %v1236_v43, inf }
 0x137   :  { %v465_v45 = vsel %vm169_vm11, %v1219_v32, inf  ;;  %v471_v16 = vsel %vm191_vm12, %v1232_v42, inf  ;;  %v464_v9 = vsel %vm168_vm14, %v1251_v53, inf }
 0x138   :  { %446 = vrot.lane.b32.xlu1 %v1193_v5, %s824_s15  ;;  %456 = vrot.lane.b32.xlu0 %v1182_v54, %s825_s16  ;;  %v469_v15 = vmin.f32 %v1170_v40, %v465_v45  ;;  %v1278_v45 = vsel %vm129_vm7, %v368_v47, %v369_v30 }
 0x13c   :  { %454 = vrot.lane.b32.xlu1 %v1193_v5, %s825_s16  ;;  %460 = vrot.lane.b32.xlu0 %v1170_v40, %s825_s16 }
 0x140   :  { %458 = vrot.lane.b32.xlu1 %v1184_v3, %s825_s16 }
 0x1a2   :  { %v453_v11 = vpop.permute.xlu0 %452 }
 0x1a3   :  { %v481_v18 = vsel %vm207_vm8, %v453_v11, inf  ;;  %v467_v11 = vmin.f32 %v1182_v54, %v463_v48 }
 0x1a6   :  { %v451_v27 = vpop.permute.xlu1 %450  ;;  %v449_v50 = vpop.permute.xlu0 %448 }
 0x1a7   :  { %v479_v38 = vsel %vm207_vm8, %v449_v50, inf  ;;  %v473_v50 = vsel %vm193_vm0, %v1247_v52, inf  ;;  %v480_v48 = vsel %vm207_vm8, %v451_v27, inf }
 0x1a8   :  { %v483_v56 = vmin.f32 %v1182_v54, %v479_v38  ;;  %v485_v38 = vmin.f32 %v1170_v40, %v481_v18  ;;  %v477_v33 = vmin.f32 %v469_v15, %v473_v50  ;;  %v484_v47 = vmin.f32 %v1184_v3, %v480_v48 }
 0x1aa   :  { %v447_v44 = vpop.permute.xlu1 %446  ;;  %v457_v2 = vpop.permute.xlu0 %456 }
 0x1ab   :  { %v478_v58 = vsel %vm207_vm8, %v447_v44, inf  ;;  %v487_v13 = vsel %vm221_vm13, %v457_v2, inf  ;;  %v474_v2 = vmin.f32 %v466_v49, %v470_v14  ;;  %v468_v49 = vmin.f32 %v1184_v3, %v464_v9 }
 0x1ac   :  { %v491_v1 = vmin.f32 %v483_v56, %v487_v13  ;;  %v482_v44 = vmin.f32 %v1193_v5, %v478_v58  ;;  %v475_v56 = vmin.f32 %v467_v11, %v471_v16 }
 0x1ae   :  { %v455_v26 = vpop.permute.xlu1 %454  ;;  %v461_v35 = vpop.permute.xlu0 %460  ;;  %v1287_v14 = vmin.f32 %v475_v56, %v491_v1 }
 0x1af   :  { %v486_v13 = vsel %vm221_vm13, %v455_v26, inf  ;;  %v489_v25 = vsel %vm221_vm13, %v461_v35, inf  ;;  %v472_v26 = vsel %vm192_vm1, %v1278_v45, inf }
 0x1b0   :  { %v490_v18 = vmin.f32 %v482_v44, %v486_v13  ;;  %v493_v58 = vmin.f32 %v485_v38, %v489_v25  ;;  %1752 = vst [vmem:[#allocation11_spill] sm:$0xff] %v1287_v14  ;;  %v476_v16 = vmin.f32 %v468_v49, %v472_v26  ;;  %v507_v1 = vrot.slane %v1287_v14, 1 }
 0x1b1   :  { %v499_v9 = vrot.slane %v1287_v14, 7 }
 0x1b2   :  { %v1290_v30 = vmin.f32 %v474_v2, %v490_v18  ;;  %v1292_v24 = vmin.f32 %v477_v33, %v493_v58  ;;  %v459_v27 = vpop.permute.xlu1 %458 }
 0x1b3   :  { %v488_v35 = vsel %vm221_vm13, %v459_v27, inf }
 0x1b4   :  { %1753 = vst [vmem:[#allocation12_spill] sm:$0xff] %v1290_v30  ;;  %1754 = vst [vmem:[#allocation13_spill] sm:$0xff] %v1292_v24  ;;  %v492_v25 = vmin.f32 %v484_v47, %v488_v35  ;;  %592 = vrot.lane.b32.xlu0 %v1292_v24, %s824_s15  ;;  %v501_v15 = vrot.slane %v1292_v24, 7  ;;  %v506_v11 = vrot.slane %v1290_v30, 1  ;;  %v498_v33 = vrot.slane %v1290_v30, 7 }
 0x1b5   :  { %v509_v48 = vrot.slane %v1292_v24, 1 }
 0x1b6   :  { %v1305_v50 = vmin.f32 %v476_v16, %v492_v25  ;;  %v1310_v38 = vsel %vm120_vm6, %v501_v15, %v498_v33  ;;  %v1321_v56 = vsel %vm129_vm7, %v506_v11, %v507_v1  ;;  %v1332_v58 = vsel %vm120_vm6, %v498_v33, %v499_v9 }
 0x1b7   :  { %v602_v13 = vsel %vm166_vm10, %v1310_v38, inf  ;;  %v610_v27 = vsel %vm190_vm15, %v1321_v56, inf  ;;  %v603_v16 = vsel %vm167_vm9, %v1332_v58, inf  ;;  %v513_v33 = vsel %vm129_vm7, %v509_v48, %v506_v11 }
 0x1b8   :  { %590 = vrot.lane.b32.xlu1 %v1305_v50, %s824_s15  ;;  %588 = vrot.lane.b32.xlu0 %v1287_v14, %s824_s15  ;;  %v500_v44 = vrot.slane %v1305_v50, 7  ;;  %v508_v2 = vrot.slane %v1305_v50, 1  ;;  %v606_v26 = vmin.f32 %v1290_v30, %v602_v13 }
 0x1ba   :  { %v1328_v18 = vsel %vm120_vm6, %v499_v9, %v500_v44  ;;  %v1336_v49 = vsel %vm129_vm7, %v507_v1, %v508_v2  ;;  %v502_v47 = vsel %vm120_vm6, %v500_v44, %v501_v15  ;;  %v1350_v35 = vsel %vm129_vm7, %v508_v2, %v509_v48 }
 0x1bb   :  { %v611_v25 = vsel %vm191_vm12, %v1336_v49, inf  ;;  %v604_v15 = vsel %vm168_vm14, %v1328_v18, inf  ;;  %v1363_v1 = vmin.f32 %v606_v26, %v610_v27  ;;  %v607_v9 = vmin.f32 %v1287_v14, %v603_v16 }
 0x1bc   :  { %586 = vrot.lane.b32.xlu1 %v1290_v30, %s824_s15  ;;  %596 = vrot.lane.b32.xlu0 %v1287_v14, %s825_s16  ;;  %v608_v44 = vmin.f32 %v1305_v50, %v604_v15  ;;  %v605_v2 = vsel %vm169_vm11, %v502_v47, inf  ;;  %v612_v11 = vsel %vm192_vm1, %v1350_v35, inf  ;;  %v613_v26 = vsel %vm193_vm0, %v513_v33, inf }
 0x1bd   :  { %v1373_v13 = vmin.f32 %v607_v9, %v611_v25  ;;  %v609_v48 = vmin.f32 %v1292_v24, %v605_v2  ;;  %v375_v25 = vsel %vm167_vm9, %v1223_v36, -inf  ;;  %v383_v15 = vsel %vm191_vm12, %v1232_v42, -inf }
 0x1be   :  { %v1379_v27 = vmin.f32 %v608_v44, %v612_v11  ;;  %v374_v9 = vsel %vm166_vm10, %v1211_v8, -inf  ;;  %v377_v44 = vsel %vm169_vm11, %v1219_v32, -inf  ;;  %v379_v36 = vmax.f32 %v1182_v54, %v375_v25 }
 0x1bf   :  { %v1383_v16 = vmin.f32 %v609_v48, %v613_v26  ;;  %v378_v42 = vmax.f32 %v1193_v5, %v374_v9  ;;  %v381_v11 = vmax.f32 %v1170_v40, %v377_v44  ;;  %v376_v8 = vsel %vm168_vm14, %v1251_v53, -inf }
 0x1c0   :  { %594 = vrot.lane.b32.xlu1 %v1290_v30, %s825_s16  ;;  %600 = vrot.lane.b32.xlu0 %v1292_v24, %s825_s16  ;;  %v1406_v2 = vmax.f32 %v379_v36, %v383_v15  ;;  %v382_v32 = vsel %vm190_vm15, %v1236_v43, -inf  ;;  %v385_v48 = vsel %vm193_vm0, %v1247_v52, -inf  ;;  %v380_v53 = vmax.f32 %v1184_v3, %v376_v8 }
 0x1c1   :  { %v1423_v26 = vmax.f32 %v378_v42, %v382_v32  ;;  %v1425_v25 = vmax.f32 %v381_v11, %v385_v48  ;;  %v384_v43 = vsel %vm192_vm1, %v1278_v45, -inf  ;;  %v517_v52 = vsel %vm169_vm11, %v502_v47, -inf }
 0x1c2   :  { %v1435_v15 = vmax.f32 %v380_v53, %v384_v43  ;;  %v521_v45 = vmax.f32 %v1292_v24, %v517_v52  ;;  %v514_v9 = vsel %vm166_vm10, %v1310_v38, -inf  ;;  %v525_v47 = vsel %vm193_vm0, %v513_v33, -inf }
 0x1c3   :  { %v518_v36 = vmax.f32 %v1290_v30, %v514_v9  ;;  %v516_v42 = vsel %vm168_vm14, %v1328_v18, -inf  ;;  %v522_v38 = vsel %vm190_vm15, %v1321_v56, -inf  ;;  %v515_v33 = vsel %vm167_vm9, %v1332_v58, -inf }
 0x1c4   :  { %598 = vrot.lane.b32.xlu1 %v1305_v50, %s825_s16  ;;  %268 = vrot.lane.b32.xlu0 %v1121_v22, %s824_s15  ;;  %v1461_v44 = vmax.f32 %v521_v45, %v525_v47  ;;  %v520_v8 = vmax.f32 %v1305_v50, %v516_v42  ;;  %v523_v18 = vsel %vm191_vm12, %v1336_v49, -inf  ;;  %v519_v56 = vmax.f32 %v1287_v14, %v515_v33 }
 0x1c5   :  { %v1477_v11 = vmax.f32 %v518_v36, %v522_v38  ;;  %v524_v58 = vsel %vm192_vm1, %v1350_v35, -inf }
 0x1c6   :  { %v1491_v32 = vmax.f32 %v520_v8, %v524_v58  ;;  %v1493_v48 = vmax.f32 %v519_v56, %v523_v18 }
 0x1c8   :  { %266 = vrot.lane.b32.xlu1 %v1118_v21, %s824_s15  ;;  %272 = vrot.lane.b32.xlu0 %v1131_v31, %s824_s15 }
 0x1cc   :  { %270 = vrot.lane.b32.xlu1 %v1136_v37, %s824_s15  ;;  %392 = vrot.lane.b32.xlu0 %v1406_v2, %s824_s15 }
 0x1d0   :  { %390 = vrot.lane.b32.xlu1 %v1423_v26, %s824_s15  ;;  %396 = vrot.lane.b32.xlu0 %v1425_v25, %s824_s15 }
 0x1d4   :  { %394 = vrot.lane.b32.xlu1 %v1435_v15, %s824_s15  ;;  %276 = vrot.lane.b32.xlu0 %v1121_v22, %s825_s16 }
 0x1d8   :  { %274 = vrot.lane.b32.xlu1 %v1118_v21, %s825_s16  ;;  %280 = vrot.lane.b32.xlu0 %v1131_v31, %s825_s16 }
 0x1dc   :  { %278 = vrot.lane.b32.xlu1 %v1136_v37, %s825_s16  ;;  %400 = vrot.lane.b32.xlu0 %v1406_v2, %s825_s16 }
 0x1e0   :  { %398 = vrot.lane.b32.xlu1 %v1423_v26, %s825_s16  ;;  %404 = vrot.lane.b32.xlu0 %v1425_v25, %s825_s16 }
 0x1e4   :  { %402 = vrot.lane.b32.xlu1 %v1435_v15, %s825_s16  ;;  %536 = vrot.lane.b32.xlu0 %v1461_v44, %s824_s15 }
 0x1e8   :  { %530 = vrot.lane.b32.xlu1 %v1477_v11, %s824_s15  ;;  %544 = vrot.lane.b32.xlu0 %v1461_v44, %s825_s16 }
 0x1ec   :  { %534 = vrot.lane.b32.xlu1 %v1491_v32, %s824_s15  ;;  %532 = vrot.lane.b32.xlu0 %v1493_v48, %s824_s15 }
 0x1f0   :  { %538 = vrot.lane.b32.xlu1 %v1477_v11, %s825_s16  ;;  %540 = vrot.lane.b32.xlu0 %v1493_v48, %s825_s16 }
 0x1f4   :  { %542 = vrot.lane.b32.xlu1 %v1491_v32, %s825_s16 }
 0x226   :  { %v593_v49 = vpop.permute.xlu0 %592 }
 0x227   :  { %v621_v47 = vsel %vm207_vm8, %v593_v49, inf }
 0x228   :  { %v625_v8 = vmin.f32 %v1292_v24, %v621_v47 }
 0x22a   :  { %v591_v35 = vpop.permute.xlu1 %590  ;;  %v589_v53 = vpop.permute.xlu0 %588 }
 0x22b   :  { %v619_v43 = vsel %vm207_vm8, %v589_v53, inf  ;;  %v620_v33 = vsel %vm207_vm8, %v591_v35, inf }
 0x22c   :  { %v623_v45 = vmin.f32 %v1287_v14, %v619_v43 }
 0x22e   :  { %v587_v52 = vpop.permute.xlu1 %586  ;;  %v597_v9 = vpop.permute.xlu0 %596 }
 0x22f   :  { %v618_v36 = vsel %vm207_vm8, %v587_v52, inf  ;;  %v627_v42 = vsel %vm221_vm13, %v597_v9, inf }
 0x230   :  { %v631_v38 = vmin.f32 %v623_v45, %v627_v42  ;;  %v622_v18 = vmin.f32 %v1290_v30, %v618_v36  ;;  %v624_v45 = vmin.f32 %v1305_v50, %v620_v33 }
 0x232   :  { %v595_v56 = vpop.permute.xlu1 %594  ;;  %v635_v58 = vmin.f32 %v1373_v13, %v631_v38  ;;  %v601_v53 = vpop.permute.xlu0 %600 }
 0x233   :  { %v626_v49 = vsel %vm221_vm13, %v595_v56, inf  ;;  %v629_v43 = vsel %vm221_vm13, %v601_v53, inf }
 0x234   :  { %v630_v52 = vmin.f32 %v622_v18, %v626_v49  ;;  %v633_v9 = vmin.f32 %v625_v8, %v629_v43  ;;  %v639_v42 = vrot.slane %v635_v58, 7  ;;  %v647_v47 = vrot.slane %v635_v58, 1 }
 0x236   :  { %v634_v35 = vmin.f32 %v1363_v1, %v630_v52  ;;  %v599_v24 = vpop.permute.xlu1 %598  ;;  %v637_v36 = vmin.f32 %v1383_v16, %v633_v9 }
 0x237   :  { %v628_v13 = vsel %vm221_vm13, %v599_v24, inf }
 0x238   :  { %v638_v38 = vrot.slane %v634_v35, 7  ;;  %v646_v14 = vrot.slane %v634_v35, 1  ;;  %v632_v56 = vmin.f32 %v624_v45, %v628_v13  ;;  %v641_v30 = vrot.slane %v637_v36, 7 }
 0x239   :  { %v649_v29 = vrot.slane %v637_v36, 1 }
 0x23a   :  { %v636_v18 = vmin.f32 %v1379_v27, %v632_v56  ;;  %v645_v33 = vsel %vm120_vm6, %v641_v30, %v638_v38  ;;  %v652_v1 = vsel %vm129_vm7, %v646_v14, %v647_v47  ;;  %v644_v8 = vsel %vm120_vm6, %v638_v38, %v639_v42  ;;  %v267_v61 = vpop.permute.xlu1 %266 }
 0x23b   :  { %v653_v16 = vsel %vm129_vm7, %v649_v29, %v646_v14  ;;  %v654_v24 = vsel %vm166_vm10, %v645_v33, -inf  ;;  %v662_v27 = vsel %vm190_vm15, %v652_v1, -inf  ;;  %v655_v52 = vsel %vm167_vm9, %v644_v8, -inf }
 0x23c   :  { %v640_v53 = vrot.slane %v636_v18, 7  ;;  %v648_v49 = vrot.slane %v636_v18, 1  ;;  %v658_v43 = vmax.f32 %v634_v35, %v654_v24  ;;  %v659_v13 = vmax.f32 %v635_v58, %v655_v52 }
 0x23d   :  { %v665_v38 = vsel %vm193_vm0, %v653_v16, -inf }
 0x23e   :  { %v642_v9 = vsel %vm120_vm6, %v640_v53, %v641_v30  ;;  %v651_v45 = vsel %vm129_vm7, %v647_v47, %v648_v49  ;;  %v643_v60 = vsel %vm120_vm6, %v639_v42, %v640_v53  ;;  %v1551_v35 = vmax.f32 %v658_v43, %v662_v27  ;;  %v271_v10 = vpop.permute.xlu1 %270 }
 0x23f   :  { %v657_v14 = vsel %vm169_vm11, %v642_v9, -inf  ;;  %v663_v62 = vsel %vm191_vm12, %v651_v45, -inf  ;;  %v650_v58 = vsel %vm129_vm7, %v648_v49, %v649_v29  ;;  %v656_v63 = vsel %vm168_vm14, %v643_v60, -inf  ;;  %v269_v29 = vpop.permute.xlu0 %268 }
 0x240   :  { %v661_v0 = vmax.f32 %v637_v36, %v657_v14  ;;  %670 = vrot.lane.b32.xlu1 %v1551_v35, %s824_s15  ;;  %v1559_v30 = vmax.f32 %v659_v13, %v663_v62  ;;  %v660_v47 = vmax.f32 %v636_v18, %v656_v63  ;;  %v664_v4 = vsel %vm192_vm1, %v650_v58, -inf }
 0x241   :  { %v283_v45 = vsel %vm207_vm8, %v269_v29, -inf  ;;  %v282_v60 = vsel %vm207_vm8, %v267_v61, -inf }
 0x242   :  { %v1565_v42 = vmax.f32 %v661_v0, %v665_v38  ;;  %v1571_v7 = vmax.f32 %v660_v47, %v664_v4  ;;  %v391_v56 = vpop.permute.xlu1 %390  ;;  %v287_v62 = vmax.f32 %v1121_v22, %v283_v45  ;;  %v286_v22 = vmax.f32 %v1118_v21, %v282_v60 }
 0x243   :  { %v273_v6 = vpop.permute.xlu0 %272  ;;  %v406_v13 = vsel %vm207_vm8, %v391_v56, -inf }
 0x244   :  { %676 = vrot.lane.b32.xlu0 %v1565_v42, %s824_s15  ;;  %674 = vrot.lane.b32.xlu1 %v1571_v7, %s824_s15  ;;  %v410_v38 = vmax.f32 %v1423_v26, %v406_v13  ;;  %v285_v47 = vsel %vm207_vm8, %v273_v6, -inf  ;;  %v284_v6 = vsel %vm207_vm8, %v271_v10, -inf }
 0x246   :  { %v395_v33 = vpop.permute.xlu1 %394 }
 0x247   :  { %v393_v36 = vpop.permute.xlu0 %392  ;;  %v408_v4 = vsel %vm207_vm8, %v395_v33, -inf }
 0x248   :  { %672 = vrot.lane.b32.xlu0 %v1559_v30, %s824_s15  ;;  %678 = vrot.lane.b32.xlu1 %v1551_v35, %s825_s16  ;;  %v407_v14 = vsel %vm207_vm8, %v393_v36, -inf  ;;  %v412_v21 = vmax.f32 %v1435_v15, %v408_v4 }
 0x249   :  { %v411_v26 = vmax.f32 %v1406_v2, %v407_v14 }
 0x24a   :  { %v275_v8 = vpop.permute.xlu1 %274 }
 0x24b   :  { %v397_v18 = vpop.permute.xlu0 %396  ;;  %v290_v29 = vsel %vm221_vm13, %v275_v8, -inf }
 0x24c   :  { %680 = vrot.lane.b32.xlu0 %v1559_v30, %s825_s16  ;;  %682 = vrot.lane.b32.xlu1 %v1571_v7, %s825_s16  ;;  %v409_v58 = vsel %vm207_vm8, %v397_v18, -inf }
 0x24d   :  { %v413_v33 = vmax.f32 %v1425_v25, %v409_v58  ;;  %v288_v25 = vmax.f32 %v1136_v37, %v284_v6 }
 0x24e   :  { %v279_v24 = vpop.permute.xlu1 %278 }
 0x24f   :  { %v277_v1 = vpop.permute.xlu0 %276  ;;  %v292_v10 = vsel %vm221_vm13, %v279_v24, -inf }
 0x250   :  { %684 = vrot.lane.b32.xlu0 %v1565_v42, %s825_s16  ;;  %v291_v8 = vsel %vm221_vm13, %v277_v1, -inf }
 0x251   :  { %v295_v60 = vmax.f32 %v287_v62, %v291_v8 }
 0x252   :  { %v399_v49 = vpop.permute.xlu1 %398 }
 0x253   :  { %v281_v16 = vpop.permute.xlu0 %280  ;;  %v414_v0 = vsel %vm221_vm13, %v399_v49, -inf  ;;  %v294_v49 = vmax.f32 %v286_v22, %v290_v29 }
 0x254   :  { %v418_v36 = vmax.f32 %v410_v38, %v414_v0  ;;  %v293_v2 = vsel %vm221_vm13, %v281_v16, -inf  ;;  %v296_v38 = vmax.f32 %v288_v25, %v292_v10 }
 0x255   :  { %v298_v15 = vsub.f32 %v942_v59, %v294_v49 }
 0x256   :  { %v403_v27 = vpop.permute.xlu1 %402  ;;  %v422_v1 = vsub.f32 %v1060_v34, %v418_v36  ;;  %v300_v29 = vsub.f32 %v920_v39, %v296_v38  ;;  %v27_v38 = vld [vmem:[%s1735_s3 + $0x8] sm:$0xff] }
 0x257   :  { %v401_v53 = vpop.permute.xlu0 %400  ;;  %v302_v62 = vmax.f32 %v298_v15, 0.0 }
 0x258   :  { %v415_v61 = vsel %vm221_vm13, %v401_v53, -inf  ;;  %v416_v53 = vsel %vm221_vm13, %v403_v27, -inf  ;;  %v426_v24 = vmax.f32 %v422_v1, 0.0  ;;  %v304_v6 = vmax.f32 %v300_v29, 0.0 }
 0x259   :  { %v419_v45 = vmax.f32 %v411_v26, %v415_v61  ;;  %v420_v14 = vmax.f32 %v412_v21, %v416_v53 }
 0x25a   :  { %v531_v9 = vpop.permute.xlu1 %530  ;;  %v430_v26 = vmul.f32 %v426_v24, %v302_v62 }
 0x25b   :  { %v405_v43 = vpop.permute.xlu0 %404  ;;  %v423_v16 = vsub.f32 %v1051_v17, %v419_v45  ;;  %v424_v4 = vsub.f32 %v1072_v46, %v420_v14  ;;  %v546_v34 = vsel %vm207_vm8, %v531_v9, -inf }
 0x25c   :  { %v417_v56 = vsel %vm221_vm13, %v405_v43, -inf  ;;  %v289_v43 = vmax.f32 %v1131_v31, %v285_v47  ;;  %v299_v47 = vsub.f32 %v938_v57, %v295_v60  ;;  %v26_v60 = vld [vmem:[%s1735_s3] sm:$0xff] }
 0x25d   :  { %v421_v13 = vmax.f32 %v413_v33, %v417_v56  ;;  %v427_v59 = vmax.f32 %v423_v16, 0.0  ;;  %v428_v46 = vmax.f32 %v424_v4, 0.0  ;;  %v803_v4 = vpop.eup %802 }
 0x25e   :  { %v535_v18 = vpop.permute.xlu1 %534  ;;  %v297_v0 = vmax.f32 %v289_v43, %v293_v2  ;;  %v434_v2 = vsub.f32 %v426_v24, %v430_v26  ;;  %v1755_v26 = vld [vmem:[#allocation8_spill] sm:$0xff] }
 0x25f   :  { %v1585_v52 = vpop.permute.xlu0 %536  ;;  %v425_v31 = vsub.f32 %v1062_v20, %v421_v13  ;;  %v303_v20 = vmax.f32 %v299_v47, 0.0  ;;  %v548_v9 = vsel %vm207_vm8, %v535_v18, -inf  ;;  %v432_v18 = vmul.f32 %v428_v46, %v304_v6 }
 0x260   :  { %v301_v37 = vsub.f32 %v926_v41, %v297_v0  ;;  %v550_v41 = vmax.f32 %v1477_v11, %v546_v34  ;;  %v549_v49 = vsel %vm207_vm8, %v1585_v52, -inf  ;;  %v552_v45 = vmax.f32 %v1491_v32, %v548_v9 }
 0x261   :  { %v429_v22 = vmax.f32 %v425_v31, 0.0  ;;  %v431_v33 = vmul.f32 %v427_v59, %v303_v20  ;;  %v553_v13 = vmax.f32 %v1461_v44, %v549_v49  ;;  %v438_v1 = vmax.f32 %v434_v2, 0.0  ;;  %v1756_v49 = vld [vmem:[#allocation5_spill] sm:$0xff] }
 0x262   :  { %v539_v58 = vpop.permute.xlu1 %538  ;;  %v305_v56 = vmax.f32 %v301_v37, 0.0  ;;  %v436_v32 = vsub.f32 %v428_v46, %v432_v18 }
 0x263   :  { %v1601_v63 = vpop.permute.xlu0 %544  ;;  %v554_v57 = vsel %vm221_vm13, %v539_v58, -inf  ;;  %v435_v10 = vsub.f32 %v427_v59, %v431_v33  ;;  %v442_v31 = vadd.f32 %v438_v1, %v302_v62 }
 0x264   :  { %v558_v53 = vmax.f32 %v550_v41, %v554_v57  ;;  %v433_v21 = vmul.f32 %v429_v22, %v305_v56  ;;  %v440_v58 = vmax.f32 %v436_v32, 0.0  ;;  %v83_v57 = vmul.f32 %v894_v23, %v27_v38 }
 0x265   :  { %v439_v0 = vmax.f32 %v435_v10, 0.0 }
 0x266   :  { %v543_v36 = vpop.permute.xlu1 %542  ;;  %v562_v25 = vsub.f32 %v1193_v5, %v558_v53  ;;  %v437_v55 = vsub.f32 %v429_v22, %v433_v21  ;;  %v31_v22 = vld [vmem:[%s1735_s3 + $0x28] sm:$0xff]  ;;  %v444_v9 = vadd.f32 %v440_v58, %v304_v6 }
 0x267   :  { %v533_v27 = vpop.permute.xlu0 %532  ;;  %v556_v11 = vsel %vm221_vm13, %v543_v36, -inf  ;;  %v1680_v59 = vadd.f32 %v439_v0, %v303_v20  ;;  %v1758_v6 = vld [vmem:[#allocation6_spill] sm:$0xff] }
 0x268   :  { %v547_v17 = vsel %vm207_vm8, %v533_v27, -inf  ;;  %v560_v52 = vmax.f32 %v552_v45, %v556_v11  ;;  %v566_v5 = vmax.f32 %v562_v25, 0.0  ;;  %v441_v16 = vmax.f32 %v437_v55, 0.0  ;;  %v1757_v45 = vld [vmem:[#allocation9_spill] sm:$0xff] }
 0x269   :  { %v551_v8 = vmax.f32 %v1493_v48, %v547_v17  ;;  %v557_v48 = vsel %vm221_vm13, %v1601_v63, -inf  ;;  %v806_v63 = vld [vmem:[%s1735_s3 + $0x10] sm:$0xff]  ;;  %v82_v17 = vmul.f32 %v902_v28, %v26_v60  ;;  %v33_v28 = vld [vmem:[%s1735_s3 + $0x38] sm:$0xff] }
 0x26a   :  { %v561_v14 = vmax.f32 %v553_v13, %v557_v48  ;;  %v74_v44 = vadd.f32 %v806_v63, %v26_v60  ;;  %v564_v15 = vsub.f32 %v1184_v3, %v560_v52  ;;  %v807_v3 = vld [vmem:[%s1735_s3 + $0x18] sm:$0xff]  ;;  %v570_v29 = vmul.f32 %v566_v5, %v442_v31 }
 0x26b   :  { %v541_v61 = vpop.permute.xlu0 %540  ;;  %v77_v34 = vadd.f32 %v807_v3, %v27_v38  ;;  %v84_v46 = vmul.f32 %v806_v63, %v1755_v26  ;;  %v1691_v41 = vadd.f32 %v441_v16, %v305_v56  ;;  %v85_v11 = vmul.f32 %v807_v3, %v1756_v49  ;;  %v1759_v16 = vld [vmem:[#allocation10_spill] sm:$0xff] }
 0x26c   :  { %v555_v39 = vsel %vm221_vm13, %v541_v61, -inf  ;;  %v75_v37 = vadd.f32 %v74_v44, %v30_v51  ;;  %v568_v61 = vmax.f32 %v564_v15, 0.0  ;;  %v574_v2 = vsub.f32 %v566_v5, %v570_v29 }
 0x26d   :  { %v559_v43 = vmax.f32 %v551_v8, %v555_v39  ;;  %v805_v39 = vpop.eup %804  ;;  %v71_v8 = vmul.f32 0.6931472, %v803_v4  ;;  %v78_v21 = vadd.f32 %v77_v34, %v31_v22  ;;  %v87_v48 = vmul.f32 %v1758_v6, %v31_v22  ;;  %v1760_v34 = vld [vmem:[#allocation12_spill] sm:$0xff] }
 0x26e   :  { %v572_v18 = vmul.f32 %v568_v61, %v444_v9  ;;  %v90_v10 = vadd.f32 %v84_v46, %v82_v17  ;;  %v73_v60 = vmul.f32 0.6931472, %v805_v39  ;;  %v578_v63 = vmax.f32 %v574_v2, 0.0 }
 0x26f   :  { %v563_v27 = vsub.f32 %v1182_v54, %v559_v43  ;;  %v565_v54 = vsub.f32 %v1170_v40, %v561_v14  ;;  %v32_v40 = vld [vmem:[%s1735_s3 + $0x30] sm:$0xff]  ;;  %v86_v43 = vmul.f32 %v1757_v45, %v30_v51  ;;  %v79_v32 = vadd.f32 %v78_v21, %v33_v28 }
 0x270   :  { %v76_v53 = vadd.f32 %v75_v37, %v32_v40  ;;  %v576_v44 = vsub.f32 %v568_v61, %v572_v18  ;;  %v88_v58 = vmul.f32 %v1759_v16, %v32_v40 }
 0x271   :  { %v567_v47 = vmax.f32 %v563_v27, 0.0  ;;  %v569_v20 = vmax.f32 %v565_v54, 0.0  ;;  %v93_v27 = vadd.f32 %v85_v11, %v83_v57  ;;  %v91_v54 = vadd.f32 %v90_v10, %v86_v43 }
 0x272   :  { %v80_v14 = vmul.f32 %v76_v53, %v71_v8  ;;  %v580_v17 = vmax.f32 %v576_v44, 0.0  ;;  %v582_v57 = vadd.f32 %v578_v63, %v442_v31  ;;  %v81_v18 = vmul.f32 %v79_v32, %v73_v60 }
 0x273   :  { %v571_v36 = vmul.f32 %v567_v47, %v1680_v59  ;;  %v573_v13 = vmul.f32 %v569_v20, %v1691_v41  ;;  %v94_v26 = vadd.f32 %v93_v27, %v87_v48  ;;  %v92_v53 = vadd.f32 %v91_v54, %v88_v58 }
 0x274   :  { %v584_v2 = vadd.f32 %v580_v17, %v444_v9 }
 0x275   :  { %v575_v25 = vsub.f32 %v567_v47, %v571_v36 }
 0x277   :  { %v579_v47 = vmax.f32 %v575_v25, 0.0 }
 0x2b2   :  { %v671_v24 = vpop.permute.xlu1 %670 }
 0x2b3   :  { %v686_v23 = vsel %vm207_vm8, %v671_v24, -inf }
 0x2b4   :  { %v690_v55 = vmax.f32 %v1551_v35, %v686_v23  ;;  %v577_v35 = vsub.f32 %v569_v20, %v573_v13 }
 0x2b6   :  { %v677_v62 = vpop.permute.xlu0 %676  ;;  %v675_v33 = vpop.permute.xlu1 %674 }
 0x2b7   :  { %v688_v0 = vsel %vm207_vm8, %v675_v33, -inf  ;;  %v689_v24 = vsel %vm207_vm8, %v677_v62, -inf  ;;  %v1762_v62 = vld [vmem:[#allocation11_spill] sm:$0xff]  ;;  %v583_v33 = vadd.f32 %v579_v47, %v1680_v59  ;;  %v96_v59 = vsub.f32 %v80_v14, %v92_v53 }
 0x2b8   :  { %v692_v37 = vmax.f32 %v1571_v7, %v688_v0  ;;  %v693_v12 = vmax.f32 %v1565_v42, %v689_v24  ;;  %v581_v7 = vmax.f32 %v577_v35, 0.0 }
 0x2ba   :  { %v673_v56 = vpop.permute.xlu0 %672  ;;  %v679_v1 = vpop.permute.xlu1 %678  ;;  %v585_v6 = vadd.f32 %v581_v7, %v1691_v41 }
 0x2bb   :  { %v687_v52 = vsel %vm207_vm8, %v673_v56, -inf  ;;  %v694_v5 = vsel %vm221_vm13, %v679_v1, -inf  ;;  %v1763_v56 = vld [vmem:[#allocation13_spill] sm:$0xff] }
 0x2bc   :  { %v691_v15 = vmax.f32 %v1559_v30, %v687_v52  ;;  %v698_v51 = vmax.f32 %v690_v55, %v694_v5  ;;  %v1761_v30 = vld [vmem:[#allocation7_spill] sm:$0xff] }
 0x2bd   :  { %v89_v22 = vmul.f32 %v1761_v30, %v33_v28 }
 0x2be   :  { %v681_v38 = vpop.permute.xlu0 %680  ;;  %v702_v29 = vsub.f32 %v1760_v34, %v698_v51  ;;  %v683_v61 = vpop.permute.xlu1 %682 }
 0x2bf   :  { %v695_v4 = vsel %vm221_vm13, %v681_v38, -inf  ;;  %v696_v40 = vsel %vm221_vm13, %v683_v61, -inf  ;;  %v95_v42 = vadd.f32 %v94_v26, %v89_v22 }
 0x2c0   :  { %v699_v3 = vmax.f32 %v691_v15, %v695_v4  ;;  %v706_v20 = vmax.f32 %v702_v29, 0.0  ;;  %v700_v39 = vmax.f32 %v692_v37, %v696_v40 }
 0x2c1   :  { %v97_v25 = vsub.f32 %v81_v18, %v95_v42 }
 0x2c2   :  { %v703_v46 = vsub.f32 %v1762_v62, %v699_v3  ;;  %v685_v36 = vpop.permute.xlu0 %684  ;;  %v710_v31 = vmul.f32 %v706_v20, %v582_v57  ;;  %v704_v11 = vsub.f32 %v1305_v50, %v700_v39 }
 0x2c3   :  { %v697_v8 = vsel %vm221_vm13, %v685_v36, -inf }
 0x2c4   :  { %v707_v21 = vmax.f32 %v703_v46, 0.0  ;;  %v701_v49 = vmax.f32 %v693_v12, %v697_v8  ;;  %v714_v28 = vsub.f32 %v706_v20, %v710_v31  ;;  %v708_v43 = vmax.f32 %v704_v11, 0.0 }
 0x2c6   :  { %v711_v23 = vmul.f32 %v707_v21, %v583_v33  ;;  %v705_v45 = vsub.f32 %v1763_v56, %v701_v49  ;;  %v718_v19 = vmax.f32 %v714_v28, 0.0  ;;  %v712_v13 = vmul.f32 %v708_v43, %v584_v2 }
 0x2c8   :  { %v715_v48 = vsub.f32 %v707_v21, %v711_v23  ;;  %v709_v10 = vmax.f32 %v705_v45, 0.0  ;;  %v716_v1 = vsub.f32 %v708_v43, %v712_v13  ;;  %v722_v50 = vadd.f32 %v718_v19, %v582_v57 }
 0x2ca   :  { %v719_v52 = vmax.f32 %v715_v48, 0.0  ;;  %v713_v55 = vmul.f32 %v709_v10, %v585_v6  ;;  %v720_v60 = vmax.f32 %v716_v1, 0.0  ;;  %v740_v27 = vmul.f32 %v722_v50, %v96_v59 }
 0x2cc   :  { %v717_v9 = vsub.f32 %v709_v10, %v713_v55  ;;  %v723_v32 = vadd.f32 %v719_v52, %v583_v33  ;;  %v724_v0 = vadd.f32 %v720_v60, %v584_v2 }
 0x2ce   :  { %v721_v63 = vmax.f32 %v717_v9, 0.0  ;;  %v741_v44 = vmul.f32 %v723_v32, %v97_v25  ;;  %v726_v41 = vmul.f32 %v724_v0, %v96_v59 }
 0x2d0   :  { %v742_v5 = vadd.f32 %v741_v44, %v740_v27  ;;  %v725_v15 = vadd.f32 %v721_v63, %v585_v6 }
 0x2d2   :  { %743 = vadd.xlane.f32.xlu0 %v742_v5  ;;  %v727_v14 = vmul.f32 %v725_v15, %v97_v25 }
 0x2d4   :  { %v728_v38 = vadd.f32 %v727_v14, %v726_v41 }
 0x2d6   :  { %729 = vadd.xlane.f32.xlu1 %v728_v38 }
 0x35f   :  { %v744_v51 = vpop.xlane.xlu0 %743 }
 0x360   :  { %v745_v16 = vrot.slane %v744_v51, 4 }
 0x362   :  { %v746_v58 = vadd.f32 %v745_v16, %v744_v51 }
 0x363   :  { %v730_v54 = vpop.xlane.xlu1 %729 }
 0x364   :  { %v747_v35 = vrot.slane %v746_v58, 2  ;;  %v731_v47 = vrot.slane %v730_v54, 4 }
 0x366   :  { %v732_v24 = vadd.f32 %v731_v47, %v730_v54  ;;  %v748_v4 = vadd.f32 %v747_v35, %v746_v58 }
 0x368   :  { %v733_v37 = vrot.slane %v732_v24, 2  ;;  %v749_v34 = vrot.slane %v748_v4, 1 }
 0x36a   :  { %v734_v3 = vadd.f32 %v733_v37, %v732_v24  ;;  %v750_v30 = vadd.f32 %v749_v34, %v748_v4 }
 0x36c   :  { %v735_v29 = vrot.slane %v734_v3, 1 }
 0x36e   :  { %v736_v61 = vadd.f32 %v735_v29, %v734_v3 }
 0x370   :  { %769 = vpush %v736_v61 }
 0x371   :  { %771 = vpush %v750_v30 }
 0x3a1   :  { %s770_s11 = spop %769 }
 0x3a2   :  { %739 = sst [smem:[#allocation2]] %s770_s11  ;;  %s772_s2 = spop %771 }
 0x3a3   :  { %753 = sst [smem:[#allocation2 + $0x1]] %s772_s2 }
 0x3a4   :  { %819 = shalt.err (!%p816_p4)
}
 0x3a5   :  { %s826_s13 = smov [#allocation2]  }
 0x3a6   :  { %763 = dma.smem_to_vmem %s826_s13, 16, %s761_s10, [#allocation3]  }
 0x3a7   :  { %820 = dma.done.wait [#allocation3], 16  }
 0x3a8   :  { %821 = vsyncadd [#allocation3], 4294967280 }
 0x3a9   :  { %767 = sfence }
 0x3aa   :  { %768 = vsyncpa [#allocation3], 1 }

</bundles_post_ra>
